<compile_context>
chip_gen: v7x
topology: tpu7x:2x2x1
jax: 0.10.0
libtpu: 0.0.40
codegen_flags: <defaults>
</compile_context>

<pallas_src>
import functools
import math

import jax
import jax.numpy as jnp
from jax import lax
from jax.experimental import pallas as pl
from jax.experimental.pallas import tpu as pltpu

IN_FEATURES = 768
OUT_FEATURES = 192
_INV_SQRT2 = 1.0 / math.sqrt(2.0)

# Cap the row tile so 2*(x tile) + weight + 2*(out tile) stays far under the
# scoped-VMEM budget on every generation (incl. v7x's 64 MiB physical VMEM):
# tm=2048 -> ~16 MiB total.
_MAX_ROWS_PER_TILE = 2048


def _gelu_linear_kernel(x_ref, w_ref, b_ref, o_ref):
    # x_ref: (tm, 768) f32   w_ref: (768, 192) bf16|f32   b_ref: (1, 192) f32
    # o_ref: (tm, 192) f32
    x = x_ref[...]
    # Exact GELU (approximate='none'): 0.5 * x * (1 + erf(x / sqrt(2))),
    # computed in f32 on the VPU.
    # TODO(synk): if a bundle dump shows VALU is the saturating slot on
    # v6e/v7x, evaluate the erf polynomial in bf16 there (keep f32 on v5e,
    # which has no bf16 VALU) and re-validate against the f32 reference.
    g = 0.5 * x * (1.0 + lax.erf(x * _INV_SQRT2))
    # MXU matmul: operands in the weight dtype (bf16 by default -> native MXU
    # path on v5e/v6e/v7x), accumulation in f32.
    acc = jnp.dot(g.astype(w_ref.dtype), w_ref[...],
                  preferred_element_type=jnp.float32)
    # Dropout(p=0.0) twice is the identity -> not emitted.
    o_ref[...] = (acc + b_ref[...]).astype(o_ref.dtype)


def _choose_row_tile(m, target_grid):
    """Static row-tile size: aim for `target_grid` steps, sublane-aligned."""
    tm = -(-m // target_grid)            # ceil(m / target_grid)
    tm = -(-tm // 8) * 8                 # round up to a multiple of 8
    return max(8, min(tm, _MAX_ROWS_PER_TILE))


def prepare_params(weight, bias, *, use_bf16_mxu=True):
    """One-time parameter prep (cast/reshape), hoisted out of the call path.

    weight: [768, 192] (x @ W layout), bias: [192].
    """
    w_dtype = jnp.bfloat16 if use_bf16_mxu else jnp.float32
    w_prep = weight.astype(w_dtype)
    b_prep = bias.astype(jnp.float32).reshape(1, OUT_FEATURES)
    return w_prep, b_prep


@functools.partial(jax.jit, static_argnames=("target_grid",))
def gelu_dropout_linear_dropout(x, w_prep, b_prep, *, target_grid=4):
    """x: [..., 768] f32.  w_prep: [768, 192].  b_prep: [1, 192] f32.

    Returns [..., 192] in x.dtype.
    """
    orig_shape = x.shape
    assert orig_shape[-1] == IN_FEATURES
    m = 1
    for d in orig_shape[:-1]:
        m *= d
    x2d = x.reshape(m, IN_FEATURES)

    tm = _choose_row_tile(m, target_grid)
    grid = pl.cdiv(m, tm)                # ragged tail masked by Pallas, no jnp.pad

    x_bytes = m * IN_FEATURES * x2d.dtype.itemsize
    w_bytes = IN_FEATURES * OUT_FEATURES * w_prep.dtype.itemsize
    o_bytes = m * OUT_FEATURES * x2d.dtype.itemsize

    out2d = pl.pallas_call(
        _gelu_linear_kernel,
        out_shape=jax.ShapeDtypeStruct((m, OUT_FEATURES), x.dtype),
        grid_spec=pltpu.PrefetchScalarGridSpec(
            num_scalar_prefetch=0,
            grid=(grid,),
            in_specs=[
                pl.BlockSpec((tm, IN_FEATURES), lambda i: (i, 0)),
                # Constant index_map -> weight/bias are DMA'd once and stay
                # resident across the (few-step) grid; no per-step re-fetch.
                pl.BlockSpec((IN_FEATURES, OUT_FEATURES), lambda i: (0, 0)),
                pl.BlockSpec((1, OUT_FEATURES), lambda i: (0, 0)),
            ],
            out_specs=pl.BlockSpec((tm, OUT_FEATURES), lambda i: (i, 0)),
        ),
        compiler_params=pltpu.CompilerParams(
            # TODO(synk): verify via xprof that the 1-D parallel grid shards
            # across v7x's two TensorCores; otherwise switch to CORE_PARALLEL.
            dimension_semantics=("parallel",),
            # Explicit scoped-VMEM limit so v5e (16 MiB default) behaves like
            # v6e/v7x if tiles/batches grow; well under v7x's 64 MiB physical.
            vmem_limit_bytes=32 * 1024 * 1024,
        ),
        cost_estimate=pl.CostEstimate(
            flops=2 * m * IN_FEATURES * OUT_FEATURES,
            transcendentals=m * IN_FEATURES,
            bytes_accessed=x_bytes + w_bytes + o_bytes,
        ),
    )(x2d, w_prep, b_prep)

    return out2d.reshape(*orig_shape[:-1], OUT_FEATURES)


def _reference(x, weight, bias):
    g = 0.5 * x * (1.0 + lax.erf(x * _INV_SQRT2))
    return jnp.einsum("...c,cf->...f", g, weight) + bias


if __name__ == "__main__":
    key = jax.random.PRNGKey(0)
    kx, kw, kb = jax.random.split(key, 3)

    # Input shape implied by the module's forward: [1, 28, 28, 768].
    x = jax.random.normal(kx, (1, 28, 28, IN_FEATURES), dtype=jnp.float32)

    # Deterministic parameter init (PyTorch Linear default: U(-1/sqrt(fan_in), +)).
    # Stored as [in_features, out_features] so the kernel does x @ W directly.
    bound = 1.0 / math.sqrt(IN_FEATURES)
    weight = jax.random.uniform(
        kw, (IN_FEATURES, OUT_FEATURES), dtype=jnp.float32,
        minval=-bound, maxval=bound)
    bias = jax.random.uniform(
        kb, (OUT_FEATURES,), dtype=jnp.float32, minval=-bound, maxval=bound)

    ref = _reference(x, weight, bias)

    # Default fast path: bf16 MXU operands, f32 accumulation, grid ~= 4.
    w_bf16, b_f32 = prepare_params(weight, bias, use_bf16_mxu=True)
    out = gelu_dropout_linear_dropout(x, w_bf16, b_f32, target_grid=4)
    out = jax.block_until_ready(out)
    assert out.shape == (1, 28, 28, OUT_FEATURES)
    # bf16-operand precision bound vs. the exact f32 reference.
    assert jnp.allclose(out, ref, atol=1e-2, rtol=1e-2)

    # Exact f32-MXU path: faithful to the f32 module semantics at tight tolerance.
    w_f32, _ = prepare_params(weight, bias, use_bf16_mxu=False)
    out_f32 = gelu_dropout_linear_dropout(x, w_f32, b_f32, target_grid=4)
    out_f32 = jax.block_until_ready(out_f32)
    assert jnp.allclose(out_f32, ref, atol=1e-4, rtol=1e-4)

    # Alternate sweep point (grid=2, tm=392) exercises the evenly-dividing path.
    out_g2 = gelu_dropout_linear_dropout(x, w_bf16, b_f32, target_grid=2)
    out_g2 = jax.block_until_ready(out_g2)
    assert jnp.allclose(out_g2, ref, atol=1e-2, rtol=1e-2)

    print("KERNEL_OK")
</pallas_src>

<mosaic_0001>
module attributes {stable_mosaic.version = 11 : i64} {
  func.func @_gelu_linear_kernel(%arg0: i32, %arg1: memref<200x768xf32, #tpu.memory_space<vmem>>, %arg2: memref<768x192xbf16, #tpu.memory_space<vmem>>, %arg3: memref<1x192xf32, #tpu.memory_space<vmem>>, %arg4: memref<200x192xf32, #tpu.memory_space<vmem>>) attributes {dimension_semantics = [#tpu.dimension_semantics<parallel>], iteration_bounds = array<i64: 4>, scalar_prefetch = 0 : i64, scratch_operands = 0 : i64, tpu.core_type = #tpu.core_type<tc>, window_params = [{transform_indices = @transform_0, window_bounds = array<i64: 200, 768>}, {pipeline_mode = #tpu.pipeline_mode<synchronous>, transform_indices = @transform_1, window_bounds = array<i64: 768, 192>}, {pipeline_mode = #tpu.pipeline_mode<synchronous>, transform_indices = @transform_2, window_bounds = array<i64: 1, 192>}, {transform_indices = @transform_3, window_bounds = array<i64: 200, 192>}]} {
    %c0 = arith.constant 0 : index
    %c0_0 = arith.constant 0 : index
    %0 = vector.load %arg1[%c0, %c0_0] : memref<200x768xf32, #tpu.memory_space<vmem>>, vector<200x768xf32>
    %cst = arith.constant 5.000000e-01 : f32
    %1 = vector.broadcast %cst : f32 to vector<200x768xf32>
    %2 = arith.mulf %1, %0 : vector<200x768xf32>
    %cst_1 = arith.constant 0.707106769 : f32
    %3 = vector.broadcast %cst_1 : f32 to vector<200x768xf32>
    %4 = arith.mulf %0, %3 : vector<200x768xf32>
    %5 = math.erf %4 : vector<200x768xf32>
    %cst_2 = arith.constant 1.000000e+00 : f32
    %6 = vector.broadcast %cst_2 : f32 to vector<200x768xf32>
    %7 = arith.addf %6, %5 : vector<200x768xf32>
    %8 = arith.mulf %2, %7 : vector<200x768xf32>
    %9 = arith.truncf %8 : vector<200x768xf32> to vector<200x768xbf16>
    %c0_3 = arith.constant 0 : index
    %c0_4 = arith.constant 0 : index
    %10 = vector.load %arg2[%c0_3, %c0_4] : memref<768x192xbf16, #tpu.memory_space<vmem>>, vector<768x192xbf16>
    %cst_5 = arith.constant dense<0.000000e+00> : vector<200x192xf32>
    %11 = tpu.matmul %9, %10, %cst_5 {dimension_numbers = #tpu.dot_dimension_numbers<[1], [0], [0], [1], [0, 0, 1, 1], [], []>} : vector<200x768xbf16>, vector<768x192xbf16>, vector<200x192xf32> -> vector<200x192xf32>
    %c0_6 = arith.constant 0 : index
    %c0_7 = arith.constant 0 : index
    %12 = vector.load %arg3[%c0_6, %c0_7] : memref<1x192xf32, #tpu.memory_space<vmem>>, vector<1x192xf32>
    %13 = vector.broadcast %12 : vector<1x192xf32> to vector<200x192xf32>
    %14 = arith.addf %11, %13 : vector<200x192xf32>
    %c0_8 = arith.constant 0 : index
    %c0_9 = arith.constant 0 : index
    %15 = vector.load %arg4[%c0_8, %c0_9] : memref<200x192xf32, #tpu.memory_space<vmem>>, vector<200x192xf32>
    tpu.vector_store %arg4[%c0_8, %c0_9], %14 {strides = array<i32>} : memref<200x192xf32, #tpu.memory_space<vmem>>, vector<200x192xf32>,
    return
  }
  func.func @transform_0(%arg0: i32) -> (i32, i32) {
    %c0_i32 = arith.constant 0 : i32
    %c0_i32_0 = arith.constant 0 : i32
    return %arg0, %c0_i32 : i32, i32
  }
  func.func @transform_1(%arg0: i32) -> (i32, i32) {
    %c0_i32 = arith.constant 0 : i32
    %c0_i32_0 = arith.constant 0 : i32
    %c0_i32_1 = arith.constant 0 : i32
    return %c0_i32, %c0_i32_0 : i32, i32
  }
  func.func @transform_2(%arg0: i32) -> (i32, i32) {
    %c0_i32 = arith.constant 0 : i32
    %c0_i32_0 = arith.constant 0 : i32
    %c0_i32_1 = arith.constant 0 : i32
    return %c0_i32, %c0_i32_0 : i32, i32
  }
  func.func @transform_3(%arg0: i32) -> (i32, i32) {
    %c0_i32 = arith.constant 0 : i32
    %c0_i32_0 = arith.constant 0 : i32
    return %arg0, %c0_i32 : i32, i32
  }
}

</mosaic_0001>

<bundles_post_ra>
// kernel: gelu_dropout_linear_dropout.1
= control target key start
LH: loop header
LB: loop body
LE: loop exit
PB: predicated region body
PF: predicated region fallthrough
CT: control target
= control target key end

     0   :  { %s3506_s12 = smov 0   ;;  %s3508_s13 = smov 0   ;;  %s5016_s0 = inlined_call_operand.vmem [shape: f32[784,768], index: 0, kind: input, shape index: {}]   ;;  %s5017_s1 = inlined_call_operand.vmem [shape: bf16[768,192], index: 1, kind: input, shape index: {}]   ;;  %s5018_s2 = inlined_call_operand.vmem [shape: f32[1,192], index: 2, kind: input, shape index: {}]   ;;  %s5019_s3 = inlined_call_operand.vmem [shape: f32[784,192], index: 3, kind: output, shape index: {}]  }
   0x1   :  { %s3510_s14 = smov 0  }
   0x2 LB: > { %s3519_s15 = sadd.s32 4294967295, %s3452_s14   ;;  %s3521_s16 = sadd.s32 1, %s3452_s14   ;;  %s3452_s14 = sphi %s3510_s14, %s5030_s14   ;;  %s3448_s13 = sphi %s3508_s13, %s5029_s13   ;;  %s3444_s12 = sphi %s3506_s12, %s5028_s12  }
   0x3   : > { %s85_s17 = ssub.s32 %s3452_s14, %s3521_s16  ;;  %s88_s18 = sadd.s32 1, %s3448_s13 }
   0x4   : > { %p86_p0 = scmp.eq.s32.totalorder %s85_s17, 0  ;;  %p98_p1 = scmp.ne.s32.totalorder %s3448_s13, %s3444_s12 }
   0x5   : > { %p99_p2 = scmp.eq.s32.totalorder %s3519_s15, 3  ;;  %p2561_p3 = scmp.ge.s32.totalorder %s3452_s14, 1 }
   0x6   : > { %s3529_s19 = scalar_select %p86_p0, %s3448_s13, %s88_s18  }
   0x7   : > { %p3531_p4 = por %p99_p2, %p98_p1  ;;  %p149_p5 = scmp.lt.s32.totalorder %s3452_s14, 5 }
   0x9   : > { %p150_p6 = pnand %p2561_p3, %p149_p5 }
   0xb   : > { %153 = sbr.rel (%p150_p6) target bundleno = 567 (0x237), region = 32 }
  0x12   : > { %v2950_v0 = vld [vmem:[%s5017_s1 + $0x4] ss:$8 sps:$4 sm:$0xff]   ;;  %v2954_v2 = vld [vmem:[%s5017_s1] ss:$8 sps:$4 sm:$0xff]   ;;  %v2956_v4 = vld [vmem:[%s5017_s1 + $0x14] ss:$8 sps:$4 sm:$0xff]  }
  0x13   : > { %v2952_v1 = vld [vmem:[%s5017_s1 + $0x104] ss:$8 sps:$4 sm:$0xff]   ;;  %1767 = vmatprep.subr.bf16.mxu1 %v2950_v0  ;;  %v2955_v3 = vld [vmem:[%s5017_s1 + $0x100] ss:$8 sps:$4 sm:$0xff]   ;;  %v2958_v5 = vld [vmem:[%s5017_s1 + $0x114] ss:$8 sps:$4 sm:$0xff]  }
  0x14   : > { %1928 = vmatprep.subr.bf16.mxu0 %v2952_v1  ;;  %1768 = vmatpush1.bf16.msra.mxu1 %v2954_v2  ;;  %v2960_v6 = vld [vmem:[%s5017_s1 + $0x10] ss:$8 sps:$4 sm:$0xff]   ;;  %v2962_v8 = vld [vmem:[%s5017_s1 + $0x24] ss:$8 sps:$4 sm:$0xff]   ;;  %v2966_v10 = vld [vmem:[%s5017_s1 + $0x20] ss:$8 sps:$4 sm:$0xff]  }
  0x15   : > { %1929 = vmatpush1.bf16.msra.mxu0 %v2955_v3  ;;  %1769 = vmatprep.subr.bf16.mxu1 %v2956_v4  ;;  %v2961_v7 = vld [vmem:[%s5017_s1 + $0x110] ss:$8 sps:$4 sm:$0xff]   ;;  %v2964_v9 = vld [vmem:[%s5017_s1 + $0x124] ss:$8 sps:$4 sm:$0xff]   ;;  %v2967_v11 = vld [vmem:[%s5017_s1 + $0x120] ss:$8 sps:$4 sm:$0xff]  }
  0x16   : > { %1930 = vmatprep.subr.bf16.mxu0 %v2958_v5  ;;  %v2968_v12 = vld [vmem:[%s5017_s1 + $0x34] ss:$8 sps:$4 sm:$0xff]   ;;  %v2972_v14 = vld [vmem:[%s5017_s1 + $0x30] ss:$8 sps:$4 sm:$0xff]   ;;  %v2974_v16 = vld [vmem:[%s5017_s1 + $0x44] ss:$8 sps:$4 sm:$0xff]  }
  0x17   : > { %v2970_v13 = vld [vmem:[%s5017_s1 + $0x134] ss:$8 sps:$4 sm:$0xff]   ;;  %v2973_v15 = vld [vmem:[%s5017_s1 + $0x130] ss:$8 sps:$4 sm:$0xff]   ;;  %v2976_v17 = vld [vmem:[%s5017_s1 + $0x144] ss:$8 sps:$4 sm:$0xff]  }
  0x18   : > { %1770 = vmatpush1.bf16.msra.mxu1 %v2960_v6  ;;  %v2978_v18 = vld [vmem:[%s5017_s1 + $0x40] ss:$8 sps:$4 sm:$0xff]   ;;  %v2980_v20 = vld [vmem:[%s5017_s1 + $0x54] ss:$8 sps:$4 sm:$0xff]   ;;  %v2984_v22 = vld [vmem:[%s5017_s1 + $0x50] ss:$8 sps:$4 sm:$0xff]  }
  0x19   : > { %1931 = vmatpush1.bf16.msra.mxu0 %v2961_v7  ;;  %1771 = vmatprep.subr.bf16.mxu1 %v2962_v8  ;;  %v2979_v19 = vld [vmem:[%s5017_s1 + $0x140] ss:$8 sps:$4 sm:$0xff]   ;;  %v2982_v21 = vld [vmem:[%s5017_s1 + $0x154] ss:$8 sps:$4 sm:$0xff]   ;;  %v2985_v23 = vld [vmem:[%s5017_s1 + $0x150] ss:$8 sps:$4 sm:$0xff]  }
  0x1a   : > { %1932 = vmatprep.subr.bf16.mxu0 %v2964_v9  ;;  %v2986_v24 = vld [vmem:[%s5017_s1 + $0x64] ss:$8 sps:$4 sm:$0xff]   ;;  %v2990_v26 = vld [vmem:[%s5017_s1 + $0x60] ss:$8 sps:$4 sm:$0xff]   ;;  %s3620_s8 = smul.u32 25, %s3519_s15  ;;  %s175_s22 = sand.u32 1, %s3444_s12  }
  0x1b   : > { %v2988_v25 = vld [vmem:[%s5017_s1 + $0x164] ss:$8 sps:$4 sm:$0xff]   ;;  %v2991_v27 = vld [vmem:[%s5017_s1 + $0x160] ss:$8 sps:$4 sm:$0xff]   ;;  %v2992_v28 = vld [vmem:[%s5017_s1 + $0x74] ss:$8 sps:$4 sm:$0xff]  }
  0x1c   : > { %1772 = vmatpush1.bf16.msra.mxu1 %v2966_v10  ;;  %v2994_v29 = vld [vmem:[%s5017_s1 + $0x174] ss:$8 sps:$4 sm:$0xff]   ;;  %v2996_v30 = vld [vmem:[%s5017_s1 + $0x70] ss:$8 sps:$4 sm:$0xff]   ;;  %p184_p7 = scmp.lt.s32.totalorder %s3620_s8, 97  ;;  %s2859_s23 = smul.u32 400, %s175_s22 }
  0x1d   : > { %1933 = vmatpush1.bf16.msra.mxu0 %v2967_v11  ;;  %1773 = vmatprep.subr.bf16.mxu1 %v2968_v12  ;;  %v2997_v31 = vld [vmem:[%s5017_s1 + $0x170] ss:$8 sps:$4 sm:$0xff]   ;;  %v2998_v32 = vld [vmem:[%s5017_s1 + $0x84] ss:$8 sps:$4 sm:$0xff]   ;;  %v3002_v34 = vld [vmem:[%s5017_s1 + $0x80] ss:$8 sps:$4 sm:$0xff]  }
  0x1e   : > { %1934 = vmatprep.subr.bf16.mxu0 %v2970_v13  ;;  %v3000_v33 = vld [vmem:[%s5017_s1 + $0x184] ss:$8 sps:$4 sm:$0xff]   ;;  %v3003_v35 = vld [vmem:[%s5017_s1 + $0x180] ss:$8 sps:$4 sm:$0xff]   ;;  %s185_s4 = scalar_select %p184_p7, %s3620_s8, 97  ;;  %vm2251_vm0 = vcmask 523264  }
  0x1f   : > { %v3004_v36 = vld [vmem:[%s5017_s1 + $0x94] ss:$8 sps:$4 sm:$0xff]   ;;  %v3008_v38 = vld [vmem:[%s5017_s1 + $0x90] ss:$8 sps:$4 sm:$0xff]   ;;  %v3010_v40 = vld [vmem:[%s5017_s1 + $0xa4] ss:$8 sps:$4 sm:$0xff]  }
  0x20   : > { %1774 = vmatpush1.bf16.msra.mxu1 %v2972_v14  ;;  %v3006_v37 = vld [vmem:[%s5017_s1 + $0x194] ss:$8 sps:$4 sm:$0xff]   ;;  %s2860_s14 = smul.u32 48, %s185_s4  ;;  %v3009_v39 = vld [vmem:[%s5017_s1 + $0x190] ss:$8 sps:$4 sm:$0xff]   ;;  %s4692_s12 = scalar_lea.vmem [#allocation2], %s2859_s23  }
  0x21   : > { %1935 = vmatpush1.bf16.msra.mxu0 %v2973_v15  ;;  %1775 = vmatprep.subr.bf16.mxu1 %v2974_v16  ;;  %v3012_v41 = vld [vmem:[%s5017_s1 + $0x1a4] ss:$8 sps:$4 sm:$0xff]   ;;  %v3014_v42 = vld [vmem:[%s5017_s1 + $0xa0] ss:$8 sps:$4 sm:$0xff]   ;;  %v3016_v44 = vld [vmem:[%s5017_s1 + $0xb4] ss:$8 sps:$4 sm:$0xff]  }
  0x22   : > { %1936 = vmatprep.subr.bf16.mxu0 %v2976_v17  ;;  %v3015_v43 = vld [vmem:[%s5017_s1 + $0x1a0] ss:$8 sps:$4 sm:$0xff]   ;;  %s3675_s4 = scalar_lea.vmem %s5016_s0, %s2860_s14  ;;  %v3018_v45 = vld [vmem:[%s5017_s1 + $0x1b4] ss:$8 sps:$4 sm:$0xff]   ;;  %v3020_v46 = vld [vmem:[%s5017_s1 + $0xb0] ss:$8 sps:$4 sm:$0xff]  }
  0x23   : > { %v3021_v47 = vld [vmem:[%s5017_s1 + $0x1b0] ss:$8 sps:$4 sm:$0xff]   ;;  %v202_v48 = vld [vmem:[%s3675_s4 + $0x8] sm:$0xff]  ;;  %v201_v56 = vld [vmem:[%s3675_s4] sm:$0xff]  ;;  %s2309_s24 = ssub.s32 (%p3531_p4), 98, %s3620_s8  ;;  %s2676_s25 = smul.u32 (%p3531_p4), 400, %s3519_s15 }
  0x24   : > { %1776 = vmatpush1.bf16.msra.mxu1 %v2978_v18  ;;  %v3022_v49 = vld [vmem:[%s5017_s1 + $0xc4] ss:$8 sps:$4 sm:$0xff]   ;;  %v208_v50 = vld [vmem:[%s3675_s4 + $0x38] sm:$0xff]  ;;  %v502_v51 = vmul.f32 0.70710677, %v202_v48  ;;  %v207_v59 = vld [vmem:[%s3675_s4 + $0x30] sm:$0xff] }
  0x25   : > { %1937 = vmatpush1.bf16.msra.mxu0 %v2979_v19  ;;  %1777 = vmatprep.subr.bf16.mxu1 %v2980_v20  ;;  %v204_v52 = vld [vmem:[%s3675_s4 + $0x18] sm:$0xff]  ;;  %v210_v53 = vld [vmem:[%s3675_s4 + $0x48] sm:$0xff]  ;;  %v508_v55 = vmul.f32 0.70710677, %v208_v50  ;;  %v501_v62 = vmul.f32 0.70710677, %v201_v56  ;;  %s4842_s28 = scalar_lea.vmem (%p3531_p4), %s5019_s3, %s2676_s25  }
  0x26   : > { %1938 = vmatprep.subr.bf16.mxu0 %v2982_v21  ;;  %v3024_v54 = vld [vmem:[%s5017_s1 + $0x1c4] ss:$8 sps:$4 sm:$0xff]   ;;  %3094 = verf.f32 %v502_v51  ;;  %v504_v57 = vmul.f32 0.70710677, %v204_v52  ;;  %v510_v58 = vmul.f32 0.70710677, %v210_v53 }
  0x27   : > { %v3026_v60 = vld [vmem:[%s5017_s1 + $0xc0] ss:$8 sps:$4 sm:$0xff]   ;;  %3096 = verf.f32 %v508_v55  ;;  %v507_v63 = vmul.f32 0.70710677, %v207_v59  ;;  %v203_v0 = vld [vmem:[%s3675_s4 + $0x10] sm:$0xff]  ;;  %v220_v7 = vld [vmem:[%s3675_s4 + $0x98] sm:$0xff] }
  0x28   : > { %1778 = vmatpush1.bf16.msra.mxu1 %v2984_v22  ;;  %v3027_v61 = vld [vmem:[%s5017_s1 + $0x1c0] ss:$8 sps:$4 sm:$0xff]   ;;  %3098 = verf.f32 %v504_v57  ;;  %v503_v2 = vmul.f32 0.70710677, %v203_v0  ;;  %v3028_v3 = vld [vmem:[%s5017_s1 + $0xd4] ss:$8 sps:$4 sm:$0xff]  }
  0x29   : > { %1939 = vmatpush1.bf16.msra.mxu0 %v2985_v23  ;;  %1779 = vmatprep.subr.bf16.mxu1 %v2986_v24  ;;  %v209_v1 = vld [vmem:[%s3675_s4 + $0x40] sm:$0xff]  ;;  %3100 = verf.f32 %v510_v58  ;;  %v214_v5 = vld [vmem:[%s3675_s4 + $0x68] sm:$0xff]  ;;  %v3030_v6 = vld [vmem:[%s5017_s1 + $0x1d4] ss:$8 sps:$4 sm:$0xff]   ;;  %v352_v11 = vmul.f32 0.5, %v202_v48  ;;  %v358_v16 = vmul.f32 0.5, %v208_v50 }
  0x2a   : > { %1940 = vmatprep.subr.bf16.mxu0 %v2988_v25  ;;  %v509_v4 = vmul.f32 0.70710677, %v209_v1  ;;  %3102 = verf.f32 %v501_v62  ;;  %v514_v8 = vmul.f32 0.70710677, %v214_v5  ;;  %v3032_v9 = vld [vmem:[%s5017_s1 + $0xd0] ss:$8 sps:$4 sm:$0xff]  }
  0x2b   : > { %v3033_v10 = vld [vmem:[%s5017_s1 + $0x1d0] ss:$8 sps:$4 sm:$0xff]   ;;  %3104 = verf.f32 %v507_v63  ;;  %v520_v12 = vmul.f32 0.70710677, %v220_v7  ;;  %v222_v14 = vld [vmem:[%s3675_s4 + $0xa8] sm:$0xff]  ;;  %v3728_v17 = vmul.f32 0.5, %v204_v52 }
  0x2c   : > { %1780 = vmatpush1.bf16.msra.mxu1 %v2990_v26  ;;  %v216_v13 = vld [vmem:[%s3675_s4 + $0x78] sm:$0xff]  ;;  %v3034_v15 = vld [vmem:[%s5017_s1 + $0xe4] ss:$8 sps:$4 sm:$0xff]   ;;  %3106 = verf.f32 %v503_v2  ;;  %v3734_v21 = vmul.f32 0.5, %v210_v53  ;;  %v3736_v22 = vmul.f32 0.5, %v201_v56  ;;  %v3738_v24 = vmul.f32 0.5, %v207_v59 }
  0x2d   : > { %1941 = vmatpush1.bf16.msra.mxu0 %v2991_v27  ;;  %1781 = vmatprep.subr.bf16.mxu1 %v2992_v28  ;;  %v516_v18 = vmul.f32 0.70710677, %v216_v13  ;;  %v213_v19 = vld [vmem:[%s3675_s4 + $0x60] sm:$0xff]  ;;  %3108 = verf.f32 %v509_v4  ;;  %v522_v23 = vmul.f32 0.70710677, %v222_v14  ;;  %v219_v25 = vld [vmem:[%s3675_s4 + $0x90] sm:$0xff] }
  0x2e   : > { %1942 = vmatprep.subr.bf16.mxu0 %v2994_v29  ;;  %v3036_v20 = vld [vmem:[%s5017_s1 + $0x1e4] ss:$8 sps:$4 sm:$0xff]   ;;  %3110 = verf.f32 %v514_v8  ;;  %v513_v26 = vmul.f32 0.70710677, %v213_v19  ;;  %v3742_v27 = vld [vmem:[%s3675_s4 + $0x70] sm:$0xff]  ;;  %v3777_v48 = vmul.f32 0.5, %v222_v14 }
  0x2f   : > { %v3745_v28 = vld [vmem:[%s3675_s4 + $0xa0] sm:$0xff]  ;;  %3112 = verf.f32 %v520_v12  ;;  %v3044_v51 = vld [vmem:[%s5017_s1 + $0xf0] ss:$8 sps:$4 sm:$0xff]   ;;  %v3790_v63 = vmul.f32 0.5, %v219_v25  ;;  %p2310_p8 = scmp.lt.s32.totalorder (%p3531_p4), %s2309_s24, 25 }
  0x30   : > { %1782 = vmatpush1.bf16.msra.mxu1 %v2996_v30  ;;  %v3038_v29 = vld [vmem:[%s5017_s1 + $0xe0] ss:$8 sps:$4 sm:$0xff]   ;;  %3114 = verf.f32 %v516_v18 }
  0x31   : > { %1943 = vmatpush1.bf16.msra.mxu0 %v2997_v31  ;;  %1783 = vmatprep.subr.bf16.mxu1 %v2998_v32  ;;  %v3039_v30 = vld [vmem:[%s5017_s1 + $0x1e0] ss:$8 sps:$4 sm:$0xff]   ;;  %v3753_v31 = vmul.f32 0.5, %v203_v0  ;;  %v3755_v32 = vmul.f32 0.5, %v209_v1  ;;  %3116 = verf.f32 %v522_v23  ;;  %v3793_v0 = vld [vmem:[%s3675_s4 + $0xd8] sm:$0xff] }
  0x32   : > { %1944 = vmatprep.subr.bf16.mxu0 %v3000_v33  ;;  %v519_v33 = vmul.f32 0.70710677, %v219_v25  ;;  %3118 = verf.f32 %v513_v26 }
  0x34   : > { %1784 = vmatpush1.bf16.msra.mxu1 %v3002_v34  ;;  %v3095_v34 = vpop.eup %3094  ;;  %3120 = verf.f32 %v519_v33 }
  0x35   : > { %1945 = vmatpush1.bf16.msra.mxu0 %v3003_v35  ;;  %1785 = vmatprep.subr.bf16.mxu1 %v3004_v36  ;;  %v3040_v35 = vld [vmem:[%s5017_s1 + $0xf4] ss:$8 sps:$4 sm:$0xff]   ;;  %v3760_v36 = vmul.f32 0.5, %v214_v5  ;;  %v3048_v5 = vld [vmem:[%s5017_s1 + $0x204] ss:$8 sps:$4 sm:$0xff]  }
  0x36   : > { %1946 = vmatprep.subr.bf16.mxu0 %v3006_v37  ;;  %v3762_v37 = vmul.f32 0.5, %v220_v7 }
  0x38   : > { %1786 = vmatpush1.bf16.msra.mxu1 %v3008_v38  ;;  %v515_v38 = vmul.f32 0.70710677, %v3742_v27 }
  0x39   : > { %1947 = vmatpush1.bf16.msra.mxu0 %v3009_v39  ;;  %1787 = vmatprep.subr.bf16.mxu1 %v3010_v40  ;;  %v3766_v39 = vld [vmem:[%s3675_s4 + $0xc8] sm:$0xff]  ;;  %v3097_v40 = vpop.eup %3096 }
  0x3a   : > { %1948 = vmatprep.subr.bf16.mxu0 %v3012_v41  ;;  %v802_v41 = vadd.f32 1.0, %v3095_v34  ;;  %3122 = verf.f32 %v515_v38  ;;  %v376_v33 = vmul.f32 0.5, %v3766_v39 }
  0x3c   : > { %1788 = vmatpush1.bf16.msra.mxu1 %v3014_v42  ;;  %v3768_v42 = vmul.f32 0.5, %v216_v13  ;;  %v952_v52 = vmul.f32 %v802_v41, %v352_v11  ;;  %v3807_v11 = vmul.f32 0.5, %v3742_v27  ;;  %v3051_v27 = vld [vmem:[%s5017_s1 + $0x214] ss:$8 sps:$4 sm:$0xff]  }
  0x3d   : > { %1949 = vmatpush1.bf16.msra.mxu0 %v3015_v43  ;;  %1789 = vmatprep.subr.bf16.mxu1 %v3016_v44  ;;  %v521_v43 = vmul.f32 0.70710677, %v3745_v28  ;;  %v3772_v44 = vld [vmem:[%s3675_s4 + $0xf8] sm:$0xff] }
  0x3e   : > { %1950 = vmatprep.subr.bf16.mxu0 %v3018_v45  ;;  %v3099_v45 = vpop.eup %3098  ;;  %v532_v58 = vmul.f32 0.70710677, %v3772_v44 }
  0x3f   : > { %v3101_v50 = vpop.eup %3100  ;;  %v804_v53 = vadd.f32 1.0, %v3099_v45  ;;  %3124 = verf.f32 %v521_v43 }
  0x40   : > { %1790 = vmatpush1.bf16.msra.mxu1 %v3020_v46  ;;  %v3042_v46 = vld [vmem:[%s5017_s1 + $0x1f4] ss:$8 sps:$4 sm:$0xff]   ;;  %v3103_v55 = vpop.eup %3102  ;;  %v810_v57 = vadd.f32 1.0, %v3101_v50 }
  0x41   : > { %1951 = vmatpush1.bf16.msra.mxu0 %v3021_v47  ;;  %1791 = vmatprep.subr.bf16.mxu1 %v3022_v49  ;;  %v808_v47 = vadd.f32 1.0, %v3097_v40  ;;  %v3779_v49 = vmul.f32 0.5, %v213_v19  ;;  %v3105_v59 = vpop.eup %3104  ;;  %v801_v62 = vadd.f32 1.0, %v3103_v55  ;;  %v3049_v40 = vld [vmem:[%s5017_s1 + $0x210] ss:$8 sps:$4 sm:$0xff]  }
  0x42   : > { %1952 = vmatprep.subr.bf16.mxu0 %v3024_v54  ;;  %v526_v54 = vmul.f32 0.70710677, %v3766_v39  ;;  %v3107_v1 = vpop.eup %3106  ;;  %v807_v4 = vadd.f32 1.0, %v3105_v59 }
  0x43   : > { %v958_v56 = vmul.f32 %v808_v47, %v358_v16  ;;  %v3109_v7 = vpop.eup %3108  ;;  %v951_v8 = vmul.f32 %v801_v62, %v3736_v22  ;;  %v528_v16 = vmul.f32 0.70710677, %v3793_v0  ;;  %v3817_v22 = vld [vmem:[%s3675_s4 + $0xc0] sm:$0xff] }
  0x44   : > { %1792 = vmatpush1.bf16.msra.mxu1 %v3026_v60  ;;  %v3045_v60 = vld [vmem:[%s5017_s1 + $0x1f0] ss:$8 sps:$4 sm:$0xff]   ;;  %3126 = verf.f32 %v526_v54  ;;  %v3111_v12 = vpop.eup %3110  ;;  %v957_v14 = vmul.f32 %v807_v4, %v3738_v24  ;;  %v525_v41 = vmul.f32 0.70710677, %v3817_v22 }
  0x45   : > { %1953 = vmatpush1.bf16.msra.mxu0 %v3027_v61  ;;  %1793 = vmatprep.subr.bf16.mxu1 %v3028_v3  ;;  %v954_v61 = vmul.f32 %v804_v53, %v3728_v17  ;;  %v1102_v2 = vpack.c.bf16 %v958_v56, %v952_v52  ;;  %v960_v3 = vmul.f32 %v810_v57, %v3734_v21  ;;  %3128 = verf.f32 %v532_v58  ;;  %v3113_v17 = vpop.eup %3112  ;;  %v3054_v52 = vld [vmem:[%s5017_s1 + $0x224] ss:$8 sps:$4 sm:$0xff]  }
  0x46   : > { %1954 = vmatprep.subr.bf16.mxu0 %v3030_v6  ;;  %v3800_v6 = vld [vmem:[%s3675_s4 + $0x108] sm:$0xff]  ;;  %v814_v19 = vadd.f32 1.0, %v3111_v12  ;;  %v3115_v23 = vpop.eup %3114  ;;  %v1101_v24 = vpack.c.bf16 %v957_v14, %v951_v8  ;;  %v820_v26 = vadd.f32 1.0, %v3113_v17  ;;  %3130 = verf.f32 %v528_v16  ;;  %v3843_v53 = vld [vmem:[%s3675_s4 + $0x100] sm:$0xff]  ;;  %v240_v8 = vld [vmem:[%s3675_s4 + $0x138] sm:$0xff] }
  0x47   : > { %1799 = vmatprep.mubr.bf16.mxu1 %v1102_v2  ;;  %v1104_v13 = vpack.c.bf16 %v960_v3, %v954_v61  ;;  %v534_v21 = vmul.f32 0.70710677, %v3800_v6  ;;  %v382_v56 = vmul.f32 0.5, %v3772_v44  ;;  %v3850_v61 = vld [vmem:[%s3675_s4 + $0x128] sm:$0xff]  ;;  %v533_v2 = vmul.f32 0.70710677, %v3843_v53 }
  0x48   : > { %1794 = vmatpush1.bf16.msra.mxu1 %v3032_v9  ;;  %v803_v9 = vadd.f32 1.0, %v3107_v1  ;;  %v3052_v44 = vld [vmem:[%s5017_s1 + $0x220] ss:$8 sps:$4 sm:$0xff]   ;;  %v3858_v3 = vld [vmem:[%s3675_s4 + $0x158] sm:$0xff]  ;;  %v384_v16 = vmul.f32 0.5, %v3800_v6 }
  0x49   : > { %1955 = vmatpush1.bf16.msra.mxu0 %v3033_v10  ;;  %1795 = vmatprep.subr.bf16.mxu1 %v3034_v15  ;;  %v3046_v10 = vld [vmem:[%s5017_s1 + $0x200] ss:$8 sps:$4 sm:$0xff]   ;;  %v809_v15 = vadd.f32 1.0, %v3109_v7  ;;  %3132 = verf.f32 %v534_v21  ;;  %v3057_v7 = vld [vmem:[%s5017_s1 + $0x234] ss:$8 sps:$4 sm:$0xff]  }
  0x4a   : > { %1956 = vmatprep.subr.bf16.mxu0 %v3036_v20  ;;  %v953_v18 = vmul.f32 %v803_v9, %v3753_v31  ;;  %v3813_v20 = vmul.f32 0.5, %v3745_v28  ;;  %1960 = vmatprep.mubr.bf16.mxu0 %v1104_v13  ;;  %v3117_v28 = vpop.eup %3116  ;;  %v816_v31 = vadd.f32 1.0, %v3115_v23  ;;  %3134 = verf.f32 %v525_v41  ;;  %v3868_v12 = vld [vmem:[%s3675_s4 + $0x168] sm:$0xff]  ;;  %v3055_v17 = vld [vmem:[%s5017_s1 + $0x230] ss:$8 sps:$4 sm:$0xff]   ;;  %v237_v23 = vld [vmem:[%s3675_s4 + $0x120] sm:$0xff] }
  0x4b   : > { %v959_v25 = vmul.f32 %v809_v15, %v3755_v32  ;;  %v3119_v34 = vpop.eup %3118  ;;  %v822_v38 = vadd.f32 1.0, %v3117_v28  ;;  %v540_v21 = vmul.f32 0.70710677, %v240_v8 }
  0x4c   : > { %1796 = vmatpush1.bf16.msra.mxu1 %v3038_v29  ;;  %v3824_v29 = vld [vmem:[%s3675_s4 + $0xf0] sm:$0xff]  ;;  %v966_v43 = vmul.f32 %v816_v31, %v3768_v42  ;;  %v813_v45 = vadd.f32 1.0, %v3119_v34  ;;  %v3058_v34 = vld [vmem:[%s5017_s1 + $0x240] ss:$8 sps:$4 sm:$0xff]  }
  0x4d   : > { %1957 = vmatpush1.bf16.msra.mxu0 %v3039_v30  ;;  %1797 = vmatprep.subr.bf16.mxu1 %v3040_v35  ;;  %v964_v30 = vmul.f32 %v814_v19, %v3760_v36  ;;  %v1103_v32 = vpack.c.bf16 %v959_v25, %v953_v18  ;;  %v970_v35 = vmul.f32 %v820_v26, %v3762_v37  ;;  %v3121_v36 = vpop.eup %3120  ;;  %v531_v39 = vmul.f32 0.70710677, %v3824_v29 }
  0x4e   : > { %1958 = vmatprep.subr.bf16.mxu0 %v3042_v46  ;;  %v3836_v46 = vld [vmem:[%s3675_s4 + $0xd0] sm:$0xff]  ;;  %v3123_v47 = vpop.eup %3122  ;;  %v972_v50 = vmul.f32 %v822_v38, %v3777_v48  ;;  %v963_v54 = vmul.f32 %v813_v45, %v3779_v49  ;;  %v546_v26 = vmul.f32 0.70710677, %v3868_v12  ;;  %v383_v45 = vmul.f32 0.5, %v3843_v53 }
  0x4f   : > { %v1108_v37 = vpack.c.bf16 %v970_v35, %v964_v30  ;;  %v3125_v42 = vpop.eup %3124  ;;  %v815_v55 = vadd.f32 1.0, %v3123_v47  ;;  %3136 = verf.f32 %v531_v39  ;;  %v381_v30 = vmul.f32 0.5, %v3824_v29  ;;  %v3900_v29 = vld [vmem:[%s3675_s4 + $0x1b8] sm:$0xff] }
  0x50   : > { %1798 = vmatpush1.bf16.msra.mxu1 %v3044_v51  ;;  %v819_v51 = vadd.f32 1.0, %v3121_v36  ;;  %v3127_v48 = vpop.eup %3126  ;;  %v1110_v57 = vpack.c.bf16 %v972_v50, %v966_v43  ;;  %v821_v59 = vadd.f32 1.0, %v3125_v42  ;;  %v377_v31 = vmul.f32 0.5, %v3836_v46 }
  0x51   : > { %1959 = vmatpush1.bf16.msra.mxu0 %v3045_v60  ;;  %2677 = vmatprep.subr.bf16.mxu1 %v3048_v5  ;;  %v527_v60 = vmul.f32 0.70710677, %v3836_v46  ;;  %v3129_v62 = vpop.eup %3128  ;;  %v965_v49 = vmul.f32 %v815_v55, %v3807_v11  ;;  %v826_v1 = vadd.f32 1.0, %v3127_v48  ;;  %v538_v11 = vmul.f32 0.70710677, %v3850_v61  ;;  %v3916_v55 = vld [vmem:[%s3675_s4 + $0x1c8] sm:$0xff] }
  0x52   : > { %2089 = vmatprep.subr.bf16.mxu0 %v3048_v5  ;;  %v969_v58 = vmul.f32 %v819_v51, %v3790_v63  ;;  %v971_v4 = vmul.f32 %v821_v59, %v3813_v20  ;;  %v832_v5 = vadd.f32 1.0, %v3129_v62  ;;  %v3131_v13 = vpop.eup %3130  ;;  %v375_v20 = vmul.f32 0.5, %v3817_v22  ;;  %v3060_v22 = vld [vmem:[%s5017_s1 + $0x244] ss:$8 sps:$4 sm:$0xff]   ;;  %v3063_v51 = vld [vmem:[%s5017_s1 + $0x254] ss:$8 sps:$4 sm:$0xff]  }
  0x53   : > { %1800 = vmatmul.mubr.bf16.vlgmr.msra.gmra.mrb[0].mxu1 %v1101_v24  ;;  %3138 = verf.f32 %v527_v60  ;;  %v976_v9 = vmul.f32 %v826_v1, %v376_v33  ;;  %v3133_v18 = vpop.eup %3132  ;;  %v828_v19 = vadd.f32 1.0, %v3131_v13  ;;  %v3878_v24 = vld [vmem:[%s3675_s4 + $0x150] sm:$0xff]  ;;  %v3890_v33 = vld [vmem:[%s3675_s4 + $0x160] sm:$0xff]  ;;  %v388_v39 = vmul.f32 0.5, %v3850_v61 }
  0x54   : > { %2693 = vmatpush1.bf16.msra.mxu1 %v3046_v10  ;;  %1961 = vmatmul.mubr.bf16.vlgmr.msra.gmra.mrb[0].mxu0 %v1103_v32  ;;  %v1107_v63 = vpack.c.bf16 %v969_v58, %v963_v54  ;;  %3140 = verf.f32 %v533_v2  ;;  %v1109_v14 = vpack.c.bf16 %v971_v4, %v965_v49  ;;  %v982_v15 = vmul.f32 %v832_v5, %v382_v56  ;;  %v3896_v32 = vld [vmem:[%s3675_s4 + $0x188] sm:$0xff]  ;;  %v3135_v35 = vpop.eup %3134  ;;  %v3913_v54 = vld [vmem:[%s3675_s4 + $0x198] sm:$0xff]  ;;  %v3934_v4 = vld [vmem:[%s3675_s4 + $0x1b0] sm:$0xff] }
  0x55   : > { %2678 = vmatprep.subr.bf16.mxu1 %v3051_v27  ;;  %2090 = vmatpush1.bf16.msra.mxu0 %v3046_v10  ;;  %v378_v10 = vmul.f32 0.5, %v3793_v0  ;;  %v544_v0 = vmul.f32 0.70710677, %v3858_v3  ;;  %3142 = verf.f32 %v538_v11  ;;  %v834_v25 = vadd.f32 1.0, %v3133_v18  ;;  %v3061_v59 = vld [vmem:[%s5017_s1 + $0x250] ss:$8 sps:$4 sm:$0xff]  }
  0x56   : > { %1809 = vmatprep.mubr.bf16.mxu1 %v1108_v37  ;;  %2091 = vmatprep.subr.bf16.mxu0 %v3051_v27  ;;  %v1114_v6 = vpack.c.bf16 %v982_v15, %v976_v9  ;;  %v3882_v27 = vld [vmem:[%s3675_s4 + $0x130] sm:$0xff]  ;;  %v543_v41 = vmul.f32 0.70710677, %v3878_v24  ;;  %v825_v43 = vadd.f32 1.0, %v3135_v35  ;;  %v545_v50 = vmul.f32 0.70710677, %v3890_v33 }
  0x57   : > { %1970 = vmatprep.mubr.bf16.mxu0 %v1110_v57  ;;  %3144 = verf.f32 %v544_v0  ;;  %v978_v28 = vmul.f32 %v828_v19, %v378_v10  ;;  %v984_v38 = vmul.f32 %v834_v25, %v384_v16  ;;  %v539_v46 = vmul.f32 0.70710677, %v3882_v27  ;;  %v3066_v1 = vld [vmem:[%s5017_s1 + $0x264] ss:$8 sps:$4 sm:$0xff]   ;;  %v3064_v15 = vld [vmem:[%s5017_s1 + $0x260] ss:$8 sps:$4 sm:$0xff]  }
  0x58   : > { %2694 = vmatpush1.bf16.msra.mxu1 %v3049_v40  ;;  %3146 = verf.f32 %v540_v21  ;;  %v394_v53 = vmul.f32 0.5, %v3858_v3  ;;  %v3910_v42 = vmul.f32 0.5, %v240_v8  ;;  %v550_v57 = vmul.f32 0.70710677, %v3896_v32  ;;  %v3952_v19 = vld [vmem:[%s3675_s4 + $0x1c0] sm:$0xff] }
  0x59   : > { %2679 = vmatprep.subr.bf16.mxu1 %v3054_v52  ;;  %2092 = vmatpush1.bf16.msra.mxu0 %v3049_v40  ;;  %3148 = verf.f32 %v546_v26  ;;  %v537_v40 = vmul.f32 0.70710677, %v237_v23  ;;  %v3137_v36 = vpop.eup %3136  ;;  %v1116_v47 = vpack.c.bf16 %v984_v38, %v978_v28  ;;  %v556_v58 = vmul.f32 0.70710677, %v3900_v29  ;;  %v3069_v25 = vld [vmem:[%s5017_s1 + $0x274] ss:$8 sps:$4 sm:$0xff]  }
  0x5a   : > { %2093 = vmatprep.subr.bf16.mxu0 %v3054_v52  ;;  %v831_v37 = vadd.f32 1.0, %v3137_v36  ;;  %v975_v52 = vmul.f32 %v825_v43, %v375_v20  ;;  %v396_v62 = vmul.f32 0.5, %v3868_v12  ;;  %v3924_v49 = vmul.f32 0.5, %v237_v23  ;;  %v3960_v28 = vld [vmem:[%s3675_s4 + $0x1e8] sm:$0xff]  ;;  %v3967_v36 = vld [vmem:[%s3675_s4 + $0x218] sm:$0xff] }
  0x5b   : > { %1810 = vmatmul.mubr.bf16.gmra.mrb[4].mxu1 %v1107_v63  ;;  %3150 = verf.f32 %v537_v40  ;;  %v552_v63 = vmul.f32 0.70710677, %v3913_v54  ;;  %v3937_v8 = vmul.f32 0.5, %v3878_v24  ;;  %v558_v9 = vmul.f32 0.70710677, %v3916_v55 }
  0x5c   : > { %2695 = vmatpush1.bf16.msra.mxu1 %v3052_v44  ;;  %1971 = vmatmul.mubr.bf16.gmra.mrb[4].mxu0 %v1109_v14  ;;  %3152 = verf.f32 %v543_v41  ;;  %v981_v48 = vmul.f32 %v831_v37, %v381_v30  ;;  %v3941_v13 = vmul.f32 0.5, %v3882_v27  ;;  %v3944_v14 = vld [vmem:[%s3675_s4 + $0x190] sm:$0xff]  ;;  %v555_v18 = vmul.f32 0.70710677, %v3934_v4 }
  0x5d   : > { %2680 = vmatprep.subr.bf16.mxu1 %v3057_v7  ;;  %2094 = vmatpush1.bf16.msra.mxu0 %v3052_v44  ;;  %v3139_v56 = vpop.eup %3138  ;;  %3154 = verf.f32 %v539_v46  ;;  %v3927_v44 = vld [vmem:[%s3675_s4 + $0x180] sm:$0xff]  ;;  %v3067_v43 = vld [vmem:[%s5017_s1 + $0x270] ss:$8 sps:$4 sm:$0xff]   ;;  %v402_v46 = vmul.f32 0.5, %v3913_v54 }
  0x5e   : > { %1819 = vmatprep.mubr.bf16.mxu1 %v1114_v6  ;;  %2095 = vmatprep.subr.bf16.mxu0 %v3057_v7  ;;  %v3141_v60 = vpop.eup %3140  ;;  %v827_v61 = vadd.f32 1.0, %v3139_v56  ;;  %3156 = verf.f32 %v545_v50  ;;  %v1113_v2 = vpack.c.bf16 %v981_v48, %v975_v52  ;;  %v549_v0 = vmul.f32 0.70710677, %v3927_v44 }
  0x5f   : > { %1980 = vmatprep.mubr.bf16.mxu0 %v1116_v47  ;;  %v833_v3 = vadd.f32 1.0, %v3141_v60  ;;  %3158 = verf.f32 %v550_v57  ;;  %v3143_v5 = vpop.eup %3142  ;;  %v395_v6 = vmul.f32 0.5, %v3890_v33  ;;  %v551_v33 = vmul.f32 0.70710677, %v3944_v14 }
  0x60   : > { %2696 = vmatpush1.bf16.msra.mxu1 %v3055_v17  ;;  %v977_v7 = vmul.f32 %v827_v61, %v377_v31  ;;  %3160 = verf.f32 %v556_v58  ;;  %v838_v12 = vadd.f32 1.0, %v3143_v5  ;;  %v562_v47 = vmul.f32 0.70710677, %v3960_v28  ;;  %v3993_v5 = vld [vmem:[%s3675_s4 + $0x1e0] sm:$0xff] }
  0x61   : > { %2681 = vmatprep.subr.bf16.mxu1 %v3060_v22  ;;  %2096 = vmatpush1.bf16.msra.mxu0 %v3055_v17  ;;  %v3145_v10 = vpop.eup %3144  ;;  %v983_v11 = vmul.f32 %v833_v3, %v383_v45  ;;  %3162 = verf.f32 %v552_v63  ;;  %v568_v57 = vmul.f32 0.70710677, %v3967_v36  ;;  %v408_v61 = vmul.f32 0.5, %v3916_v55  ;;  %v3075_v55 = vld [vmem:[%s5017_s1 + $0x294] ss:$8 sps:$4 sm:$0xff]  }
  0x62   : > { %2097 = vmatprep.subr.bf16.mxu0 %v3060_v22  ;;  %v3147_v16 = vpop.eup %3146  ;;  %v844_v17 = vadd.f32 1.0, %v3145_v10  ;;  %3164 = verf.f32 %v558_v9  ;;  %v988_v23 = vmul.f32 %v838_v12, %v388_v39  ;;  %v400_v22 = vmul.f32 0.5, %v3896_v32 }
  0x63   : > { %1820 = vmatmul.mubr.bf16.gmra.mrb[8].mxu1 %v1113_v2  ;;  %v3149_v20 = vpop.eup %3148  ;;  %v1115_v21 = vpack.c.bf16 %v983_v11, %v977_v7  ;;  %v840_v24 = vadd.f32 1.0, %v3147_v16  ;;  %3166 = verf.f32 %v549_v0  ;;  %v406_v32 = vmul.f32 0.5, %v3900_v29  ;;  %v3072_v29 = vld [vmem:[%s5017_s1 + $0x284] ss:$8 sps:$4 sm:$0xff]   ;;  %v4002_v16 = vld [vmem:[%s3675_s4 + $0x210] sm:$0xff] }
  0x64   : > { %2697 = vmatpush1.bf16.msra.mxu1 %v3058_v34  ;;  %v994_v26 = vmul.f32 %v844_v17, %v394_v53  ;;  %v846_v27 = vadd.f32 1.0, %v3149_v20  ;;  %3168 = verf.f32 %v555_v18  ;;  %v3979_v53 = vld [vmem:[%s3675_s4 + $0x1f8] sm:$0xff]  ;;  %v4005_v17 = vld [vmem:[%s3675_s4 + $0x1f0] sm:$0xff]  ;;  %v401_v20 = vmul.f32 0.5, %v3944_v14  ;;  %v3078_v14 = vld [vmem:[%s5017_s1 + $0x2a4] ss:$8 sps:$4 sm:$0xff]  }
  0x65   : > { %2682 = vmatprep.subr.bf16.mxu1 %v3063_v51  ;;  %2098 = vmatpush1.bf16.msra.mxu0 %v3058_v34  ;;  %v3151_v30 = vpop.eup %3150  ;;  %v990_v31 = vmul.f32 %v840_v24, %v3910_v42  ;;  %v557_v34 = vmul.f32 0.70710677, %v3952_v19  ;;  %3170 = verf.f32 %v551_v33  ;;  %v3982_v42 = vld [vmem:[%s3675_s4 + $0x228] sm:$0xff]  ;;  %v564_v9 = vmul.f32 0.70710677, %v3979_v53 }
  0x66   : > { %2099 = vmatprep.subr.bf16.mxu0 %v3063_v51  ;;  %1981 = vmatmul.mubr.bf16.gmra.mrb[8].mxu0 %v1115_v21  ;;  %v3153_v35 = vpop.eup %3152  ;;  %v1120_v38 = vpack.c.bf16 %v994_v26, %v988_v23  ;;  %v996_v40 = vmul.f32 %v846_v27, %v396_v62  ;;  %v837_v41 = vadd.f32 1.0, %v3151_v30  ;;  %v399_v62 = vmul.f32 0.5, %v3927_v44  ;;  %v4010_v23 = vld [vmem:[%s3675_s4 + $0x220] sm:$0xff]  ;;  %v3073_v24 = vld [vmem:[%s5017_s1 + $0x290] ss:$8 sps:$4 sm:$0xff]  }
  0x67   : > { %v3155_v45 = vpop.eup %3154  ;;  %v843_v39 = vadd.f32 1.0, %v3153_v35  ;;  %3172 = verf.f32 %v557_v34  ;;  %v570_v10 = vmul.f32 0.70710677, %v3982_v42  ;;  %v561_v21 = vmul.f32 0.70710677, %v3993_v5 }
  0x68   : > { %2698 = vmatpush1.bf16.msra.mxu1 %v3061_v59  ;;  %v3157_v37 = vpop.eup %3156  ;;  %1829 = vmatprep.mubr.bf16.mxu1 %v1120_v38  ;;  %v1122_v50 = vpack.c.bf16 %v996_v40, %v990_v31  ;;  %v987_v51 = vmul.f32 %v837_v41, %v3924_v49  ;;  %v839_v52 = vadd.f32 1.0, %v3155_v45  ;;  %3174 = verf.f32 %v562_v47  ;;  %v3070_v49 = vld [vmem:[%s5017_s1 + $0x280] ss:$8 sps:$4 sm:$0xff]   ;;  %v4025_v45 = vld [vmem:[%s3675_s4 + $0x278] sm:$0xff] }
  0x69   : > { %2683 = vmatprep.subr.bf16.mxu1 %v3066_v1  ;;  %2100 = vmatpush1.bf16.msra.mxu0 %v3061_v59  ;;  %v3159_v54 = vpop.eup %3158  ;;  %v993_v56 = vmul.f32 %v843_v39, %v3937_v8  ;;  %v845_v48 = vadd.f32 1.0, %v3157_v37  ;;  %3176 = verf.f32 %v568_v57  ;;  %v567_v30 = vmul.f32 0.70710677, %v4002_v16  ;;  %v4028_v39 = vld [vmem:[%s3675_s4 + $0x258] sm:$0xff]  ;;  %v4033_v37 = vld [vmem:[%s3675_s4 + $0x288] sm:$0xff] }
  0x6a   : > { %2101 = vmatprep.subr.bf16.mxu0 %v3066_v1  ;;  %v3161_v58 = vpop.eup %3160  ;;  %1990 = vmatprep.mubr.bf16.mxu0 %v1122_v50  ;;  %v989_v59 = vmul.f32 %v839_v52, %v3941_v13  ;;  %v850_v60 = vadd.f32 1.0, %v3159_v54  ;;  %3178 = verf.f32 %v564_v9  ;;  %v412_v35 = vmul.f32 0.5, %v3960_v28  ;;  %v3076_v50 = vld [vmem:[%s5017_s1 + $0x2a0] ss:$8 sps:$4 sm:$0xff]   ;;  %v3084_v9 = vld [vmem:[%s5017_s1 + $0x2c4] ss:$8 sps:$4 sm:$0xff]  }
  0x6b   : > { %v3163_v1 = vpop.eup %3162  ;;  %v1119_v2 = vpack.c.bf16 %v993_v56, %v987_v51  ;;  %v995_v3 = vmul.f32 %v845_v48, %v395_v6  ;;  %v856_v63 = vadd.f32 1.0, %v3161_v58  ;;  %3180 = verf.f32 %v570_v10 }
  0x6c   : > { %2699 = vmatpush1.bf16.msra.mxu1 %v3064_v15  ;;  %v3165_v44 = vpop.eup %3164  ;;  %v1000_v7 = vmul.f32 %v850_v60, %v400_v22  ;;  %v852_v8 = vadd.f32 1.0, %v3163_v1  ;;  %v407_v22 = vmul.f32 0.5, %v3952_v19  ;;  %3182 = verf.f32 %v561_v21  ;;  %v4049_v1 = vld [vmem:[%s3675_s4 + $0x270] sm:$0xff] }
  0x6d   : > { %2684 = vmatprep.subr.bf16.mxu1 %v3069_v25  ;;  %2102 = vmatpush1.bf16.msra.mxu0 %v3064_v15  ;;  %v1121_v11 = vpack.c.bf16 %v995_v3, %v989_v59  ;;  %v1006_v12 = vmul.f32 %v856_v63, %v406_v32  ;;  %v858_v13 = vadd.f32 1.0, %v3165_v44  ;;  %v405_v15 = vmul.f32 0.5, %v3934_v4  ;;  %v3167_v0 = vpop.eup %3166  ;;  %v4044_v59 = vld [vmem:[%s3675_s4 + $0x240] sm:$0xff]  ;;  %v4054_v63 = vld [vmem:[%s3675_s4 + $0x250] sm:$0xff] }
  0x6e   : > { %2103 = vmatprep.subr.bf16.mxu0 %v3069_v25  ;;  %1830 = vmatmul.mubr.bf16.gmra.mrb[12].mxu1 %v1119_v2  ;;  %v1002_v18 = vmul.f32 %v852_v8, %v402_v46  ;;  %v3169_v4 = vpop.eup %3168  ;;  %v849_v26 = vadd.f32 1.0, %v3167_v0  ;;  %v563_v38 = vmul.f32 0.70710677, %v4005_v17  ;;  %3184 = verf.f32 %v567_v30 }
  0x6f   : > { %1991 = vmatmul.mubr.bf16.gmra.mrb[12].mxu0 %v1121_v11  ;;  %v1126_v6 = vpack.c.bf16 %v1006_v12, %v1000_v7  ;;  %v1008_v25 = vmul.f32 %v858_v13, %v408_v61  ;;  %v855_v27 = vadd.f32 1.0, %v3169_v4  ;;  %v3171_v31 = vpop.eup %3170  ;;  %v569_v32 = vmul.f32 0.70710677, %v4010_v23  ;;  %v4073_v4 = vld [vmem:[%s3675_s4 + $0x2a8] sm:$0xff] }
  0x70   : > { %2700 = vmatpush1.bf16.msra.mxu1 %v3067_v43  ;;  %v999_v34 = vmul.f32 %v849_v26, %v399_v62  ;;  %v851_v19 = vadd.f32 1.0, %v3171_v31  ;;  %v418_v28 = vmul.f32 0.5, %v3967_v36  ;;  %3186 = verf.f32 %v563_v38  ;;  %v3081_v36 = vld [vmem:[%s5017_s1 + $0x2b4] ss:$8 sps:$4 sm:$0xff]  }
  0x71   : > { %2685 = vmatprep.subr.bf16.mxu1 %v3072_v29  ;;  %2104 = vmatpush1.bf16.msra.mxu0 %v3067_v43  ;;  %v1128_v33 = vpack.c.bf16 %v1008_v25, %v1002_v18  ;;  %v3173_v40 = vpop.eup %3172  ;;  %v1005_v41 = vmul.f32 %v855_v27, %v405_v15  ;;  %v274_v43 = vld [vmem:[%s3675_s4 + $0x248] sm:$0xff]  ;;  %3188 = verf.f32 %v569_v32  ;;  %v420_v48 = vmul.f32 0.5, %v3982_v42  ;;  %v4067_v15 = vld [vmem:[%s3675_s4 + $0x280] sm:$0xff]  ;;  %v4083_v27 = vld [vmem:[%s3675_s4 + $0x2d8] sm:$0xff] }
  0x72   : > { %2105 = vmatprep.subr.bf16.mxu0 %v3072_v29  ;;  %1839 = vmatprep.mubr.bf16.mxu1 %v1126_v6  ;;  %v3175_v46 = vpop.eup %3174  ;;  %v857_v47 = vadd.f32 1.0, %v3173_v40  ;;  %v414_v29 = vmul.f32 0.5, %v3979_v53  ;;  %v1001_v52 = vmul.f32 %v851_v19, %v401_v20  ;;  %v574_v57 = vmul.f32 0.70710677, %v274_v43  ;;  %v4096_v32 = vld [vmem:[%s3675_s4 + $0x2e8] sm:$0xff] }
  0x73   : > { %2000 = vmatprep.mubr.bf16.mxu0 %v1128_v33  ;;  %v1125_v51 = vpack.c.bf16 %v1005_v41, %v999_v34  ;;  %v862_v54 = vadd.f32 1.0, %v3175_v46  ;;  %v3177_v53 = vpop.eup %3176  ;;  %v580_v58 = vmul.f32 0.70710677, %v4025_v45  ;;  %v411_v62 = vmul.f32 0.5, %v3993_v5  ;;  %v4089_v34 = vld [vmem:[%s3675_s4 + $0x2b8] sm:$0xff] }
  0x74   : > { %2701 = vmatpush1.bf16.msra.mxu1 %v3070_v49  ;;  %v1007_v56 = vmul.f32 %v857_v47, %v407_v22  ;;  %v868_v60 = vadd.f32 1.0, %v3177_v53  ;;  %v417_v3 = vmul.f32 0.5, %v4002_v16  ;;  %3190 = verf.f32 %v574_v57  ;;  %v3179_v44 = vpop.eup %3178  ;;  %v4110_v53 = vld [vmem:[%s3675_s4 + $0x2d0] sm:$0xff] }
  0x75   : > { %2686 = vmatprep.subr.bf16.mxu1 %v3075_v55  ;;  %2106 = vmatpush1.bf16.msra.mxu0 %v3070_v49  ;;  %v1012_v61 = vmul.f32 %v862_v54, %v412_v35  ;;  %v576_v49 = vmul.f32 0.70710677, %v4028_v39  ;;  %v582_v42 = vmul.f32 0.70710677, %v4033_v37  ;;  %v413_v7 = vmul.f32 0.5, %v4005_v17  ;;  %v3181_v10 = vpop.eup %3180 }
  0x76   : > { %2107 = vmatprep.subr.bf16.mxu0 %v3075_v55  ;;  %1840 = vmatmul.mubr.bf16.gmra.mrb[16].mxu1 %v1125_v51  ;;  %v1127_v2 = vpack.c.bf16 %v1007_v56, %v1001_v52  ;;  %v3079_v55 = vld [vmem:[%s5017_s1 + $0x2b0] ss:$8 sps:$4 sm:$0xff]   ;;  %v1018_v5 = vmul.f32 %v868_v60, %v418_v28  ;;  %3192 = verf.f32 %v580_v58  ;;  %v573_v8 = vmul.f32 0.70710677, %v4044_v59  ;;  %v3183_v16 = vpop.eup %3182  ;;  %v3087_v35 = vld [vmem:[%s5017_s1 + $0x2d4] ss:$8 sps:$4 sm:$0xff]  }
  0x77   : > { %v864_v11 = vadd.f32 1.0, %v3179_v44  ;;  %v419_v12 = vmul.f32 0.5, %v4010_v23  ;;  %3194 = verf.f32 %v576_v49  ;;  %v579_v13 = vmul.f32 0.70710677, %v4049_v1  ;;  %v3082_v23 = vld [vmem:[%s5017_s1 + $0x2c0] ss:$8 sps:$4 sm:$0xff]  }
  0x78   : > { %2702 = vmatpush1.bf16.msra.mxu1 %v3073_v24  ;;  %2001 = vmatmul.mubr.bf16.gmra.mrb[16].mxu0 %v1127_v2  ;;  %v1132_v17 = vpack.c.bf16 %v1018_v5, %v1012_v61  ;;  %v870_v0 = vadd.f32 1.0, %v3181_v10  ;;  %v4069_v18 = vmul.f32 0.5, %v274_v43  ;;  %3196 = verf.f32 %v582_v42  ;;  %v3185_v6 = vpop.eup %3184  ;;  %v3085_v51 = vld [vmem:[%s5017_s1 + $0x2d0] ss:$8 sps:$4 sm:$0xff]   ;;  %v3090_v56 = vld [vmem:[%s5017_s1 + $0x2e4] ss:$8 sps:$4 sm:$0xff]  }
  0x79   : > { %2687 = vmatprep.subr.bf16.mxu1 %v3078_v14  ;;  %2108 = vmatpush1.bf16.msra.mxu0 %v3073_v24  ;;  %v1014_v20 = vmul.f32 %v864_v11, %v414_v29  ;;  %v861_v21 = vadd.f32 1.0, %v3183_v16  ;;  %3198 = verf.f32 %v573_v8  ;;  %v575_v24 = vmul.f32 0.70710677, %v4054_v63  ;;  %v4119_v2 = vld [vmem:[%s3675_s4 + $0x2b0] sm:$0xff]  ;;  %v3088_v5 = vld [vmem:[%s5017_s1 + $0x2e0] ss:$8 sps:$4 sm:$0xff]  }
  0x7a   : > { %2109 = vmatprep.subr.bf16.mxu0 %v3078_v14  ;;  %1849 = vmatprep.mubr.bf16.mxu1 %v1132_v17  ;;  %v1020_v25 = vmul.f32 %v870_v0, %v420_v48  ;;  %v4079_v26 = vmul.f32 0.5, %v4025_v45  ;;  %3200 = verf.f32 %v579_v13  ;;  %v581_v14 = vmul.f32 0.70710677, %v4067_v15  ;;  %v3187_v22 = vpop.eup %3186  ;;  %v3093_v11 = vld [vmem:[%s5017_s1 + $0x2f4] ss:$8 sps:$4 sm:$0xff]  }
  0x7b   : > { %v867_v30 = vadd.f32 1.0, %v3185_v6  ;;  %v1011_v31 = vmul.f32 %v861_v21, %v411_v62  ;;  %v4086_v33 = vmul.f32 0.5, %v4028_v39  ;;  %3202 = verf.f32 %v575_v24  ;;  %v3189_v38 = vpop.eup %3188  ;;  %v4139_v24 = vld [vmem:[%s3675_s4 + $0x308] sm:$0xff] }
  0x7c   : > { %2703 = vmatpush1.bf16.msra.mxu1 %v3076_v50  ;;  %v1134_v40 = vpack.c.bf16 %v1020_v25, %v1014_v20  ;;  %v863_v41 = vadd.f32 1.0, %v3187_v22  ;;  %3204 = verf.f32 %v581_v14  ;;  %v586_v19 = vmul.f32 0.70710677, %v4073_v4  ;;  %v3091_v14 = vld [vmem:[%s5017_s1 + $0x2f0] ss:$8 sps:$4 sm:$0xff]  }
  0x7d   : > { %2110 = vmatpush1.bf16.msra.mxu0 %v3076_v50  ;;  %2688 = vmatprep.subr.bf16.mxu1 %v3081_v36  ;;  %v1017_v43 = vmul.f32 %v867_v30, %v417_v3  ;;  %v869_v45 = vadd.f32 1.0, %v3189_v38  ;;  %v432_v39 = vmul.f32 0.5, %v4033_v37  ;;  %v592_v46 = vmul.f32 0.70710677, %v4083_v27  ;;  %v4103_v50 = vld [vmem:[%s3675_s4 + $0x2a0] sm:$0xff] }
  0x7e   : > { %2111 = vmatprep.subr.bf16.mxu0 %v3081_v36  ;;  %2010 = vmatprep.mubr.bf16.mxu0 %v1134_v40  ;;  %v1013_v47 = vmul.f32 %v863_v41, %v413_v7  ;;  %v423_v28 = vmul.f32 0.5, %v4044_v59  ;;  %3206 = verf.f32 %v586_v19  ;;  %v588_v29 = vmul.f32 0.70710677, %v4089_v34  ;;  %v3191_v52 = vpop.eup %3190  ;;  %v4122_v3 = vld [vmem:[%s3675_s4 + $0x2e0] sm:$0xff] }
  0x7f   : > { %v1131_v37 = vpack.c.bf16 %v1017_v43, %v1011_v31  ;;  %v1019_v54 = vmul.f32 %v869_v45, %v419_v12  ;;  %3208 = verf.f32 %v592_v46  ;;  %v594_v36 = vmul.f32 0.70710677, %v4096_v32 }
  0x80   : > { %2704 = vmatpush1.bf16.msra.mxu1 %v3079_v55  ;;  %v3193_v48 = vpop.eup %3192  ;;  %v874_v57 = vadd.f32 1.0, %v3191_v52  ;;  %v429_v58 = vmul.f32 0.5, %v4049_v1  ;;  %v425_v59 = vmul.f32 0.5, %v4054_v63  ;;  %3210 = verf.f32 %v588_v29  ;;  %v4159_v52 = vld [vmem:[%s3675_s4 + $0x300] sm:$0xff] }
  0x81   : > { %2112 = vmatpush1.bf16.msra.mxu0 %v3079_v55  ;;  %2689 = vmatprep.subr.bf16.mxu1 %v3084_v9  ;;  %v3195_v60 = vpop.eup %3194  ;;  %v1133_v61 = vpack.c.bf16 %v1019_v54, %v1013_v47  ;;  %v880_v62 = vadd.f32 1.0, %v3193_v48  ;;  %3212 = verf.f32 %v594_v36  ;;  %v585_v49 = vmul.f32 0.70710677, %v4103_v50  ;;  %v306_v47 = vld [vmem:[%s3675_s4 + $0x348] sm:$0xff] }
  0x82   : > { %2113 = vmatprep.subr.bf16.mxu0 %v3084_v9  ;;  %1850 = vmatmul.mubr.bf16.gmra.mrb[20].mxu1 %v1131_v37  ;;  %v3197_v42 = vpop.eup %3196  ;;  %v1024_v55 = vmul.f32 %v874_v57, %v4069_v18  ;;  %v876_v44 = vadd.f32 1.0, %v3195_v60  ;;  %v431_v1 = vmul.f32 0.5, %v4067_v15  ;;  %v591_v63 = vmul.f32 0.70710677, %v4110_v53 }
  0x83   : > { %v3199_v7 = vpop.eup %3198  ;;  %2011 = vmatmul.mubr.bf16.gmra.mrb[20].mxu0 %v1133_v61  ;;  %v1030_v8 = vmul.f32 %v880_v62, %v4079_v26  ;;  %v882_v9 = vadd.f32 1.0, %v3197_v42  ;;  %v436_v10 = vmul.f32 0.5, %v4073_v4  ;;  %3214 = verf.f32 %v585_v49  ;;  %v4142_v4 = vld [vmem:[%s3675_s4 + $0x338] sm:$0xff]  ;;  %v4165_v62 = vld [vmem:[%s3675_s4 + $0x310] sm:$0xff] }
  0x84   : > { %2705 = vmatpush1.bf16.msra.mxu1 %v3082_v23  ;;  %v3201_v12 = vpop.eup %3200  ;;  %v1026_v13 = vmul.f32 %v876_v44, %v4086_v33  ;;  %v873_v15 = vadd.f32 1.0, %v3199_v7  ;;  %3216 = verf.f32 %v591_v63  ;;  %v587_v16 = vmul.f32 0.70710677, %v4119_v2  ;;  %v4149_v33 = vld [vmem:[%s3675_s4 + $0x318] sm:$0xff] }
  0x85   : > { %2114 = vmatpush1.bf16.msra.mxu0 %v3082_v23  ;;  %2690 = vmatprep.subr.bf16.mxu1 %v3087_v35  ;;  %v3203_v17 = vpop.eup %3202  ;;  %v1138_v0 = vpack.c.bf16 %v1030_v8, %v1024_v55  ;;  %v1032_v18 = vmul.f32 %v882_v9, %v432_v39  ;;  %v879_v20 = vadd.f32 1.0, %v3201_v12  ;;  %v593_v21 = vmul.f32 0.70710677, %v4122_v3  ;;  %v310_v12 = vld [vmem:[%s3675_s4 + $0x368] sm:$0xff] }
  0x86   : > { %2115 = vmatprep.subr.bf16.mxu0 %v3087_v35  ;;  %v3205_v23 = vpop.eup %3204  ;;  %v1023_v6 = vmul.f32 %v873_v15, %v423_v28  ;;  %v875_v25 = vadd.f32 1.0, %v3203_v17  ;;  %v442_v26 = vmul.f32 0.5, %v4083_v27  ;;  %3218 = verf.f32 %v587_v16 }
  0x87   : > { %1859 = vmatprep.mubr.bf16.mxu1 %v1138_v0  ;;  %v1140_v22 = vpack.c.bf16 %v1032_v18, %v1026_v13  ;;  %v1029_v30 = vmul.f32 %v879_v20, %v429_v58  ;;  %v881_v31 = vadd.f32 1.0, %v3205_v23  ;;  %3220 = verf.f32 %v593_v21  ;;  %v316_v0 = vld [vmem:[%s3675_s4 + $0x398] sm:$0xff] }
  0x88   : > { %2706 = vmatpush1.bf16.msra.mxu1 %v3085_v51  ;;  %v3207_v35 = vpop.eup %3206  ;;  %v1025_v38 = vmul.f32 %v875_v25, %v425_v59  ;;  %v438_v27 = vmul.f32 0.5, %v4089_v34  ;;  %v598_v40 = vmul.f32 0.70710677, %v4139_v24  ;;  %v604_v41 = vmul.f32 0.70710677, %v4142_v4  ;;  %v4176_v21 = vld [vmem:[%s3675_s4 + $0x378] sm:$0xff] }
  0x89   : > { %2116 = vmatpush1.bf16.msra.mxu0 %v3085_v51  ;;  %2691 = vmatprep.subr.bf16.mxu1 %v3090_v56  ;;  %v3209_v19 = vpop.eup %3208  ;;  %v1137_v43 = vpack.c.bf16 %v1029_v30, %v1023_v6  ;;  %v1031_v45 = vmul.f32 %v881_v31, %v431_v1  ;;  %v886_v39 = vadd.f32 1.0, %v3207_v35  ;;  %v444_v46 = vmul.f32 0.5, %v4096_v32  ;;  %v305_v1 = vld [vmem:[%s3675_s4 + $0x340] sm:$0xff] }
  0x8a   : > { %2117 = vmatprep.subr.bf16.mxu0 %v3090_v56  ;;  %2020 = vmatprep.mubr.bf16.mxu0 %v1140_v22  ;;  %v3211_v28 = vpop.eup %3210  ;;  %v892_v29 = vadd.f32 1.0, %v3209_v19  ;;  %v435_v51 = vmul.f32 0.5, %v4103_v50  ;;  %3222 = verf.f32 %v598_v40  ;;  %v600_v34 = vmul.f32 0.70710677, %v4149_v33  ;;  %v303_v50 = vld [vmem:[%s3675_s4 + $0x330] sm:$0xff]  ;;  %v4183_v35 = vld [vmem:[%s3675_s4 + $0x360] sm:$0xff] }
  0x8b   : > { %v3213_v37 = vpop.eup %3212  ;;  %1860 = vmatmul.mubr.bf16.gmra.mrb[24].mxu1 %v1137_v43  ;;  %v1139_v54 = vpack.c.bf16 %v1031_v45, %v1025_v38  ;;  %v1036_v36 = vmul.f32 %v886_v39, %v436_v10  ;;  %v888_v56 = vadd.f32 1.0, %v3211_v28  ;;  %3224 = verf.f32 %v604_v41  ;;  %v4188_v40 = vld [vmem:[%s3675_s4 + $0x390] sm:$0xff] }
  0x8c   : > { %2707 = vmatpush1.bf16.msra.mxu1 %v3088_v5  ;;  %v1042_v32 = vmul.f32 %v892_v29, %v442_v26  ;;  %v894_v48 = vadd.f32 1.0, %v3213_v37  ;;  %v606_v57 = vmul.f32 0.70710677, %v306_v47  ;;  %3226 = verf.f32 %v600_v34  ;;  %v4197_v37 = vld [vmem:[%s3675_s4 + $0x3a0] sm:$0xff] }
  0x8d   : > { %2118 = vmatpush1.bf16.msra.mxu0 %v3088_v5  ;;  %2692 = vmatprep.subr.bf16.mxu1 %v3093_v11  ;;  %v3215_v58 = vpop.eup %3214  ;;  %v1038_v59 = vmul.f32 %v888_v56, %v438_v27  ;;  %v441_v60 = vmul.f32 0.5, %v4110_v53  ;;  %v597_v61 = vmul.f32 0.70710677, %v4159_v52  ;;  %v437_v5 = vmul.f32 0.5, %v4119_v2 }
  0x8e   : > { %2119 = vmatprep.subr.bf16.mxu0 %v3093_v11  ;;  %2021 = vmatmul.mubr.bf16.gmra.mrb[24].mxu0 %v1139_v54  ;;  %v3217_v49 = vpop.eup %3216  ;;  %v1144_v42 = vpack.c.bf16 %v1042_v32, %v1036_v36  ;;  %v1044_v55 = vmul.f32 %v894_v48, %v444_v46  ;;  %v885_v44 = vadd.f32 1.0, %v3215_v58  ;;  %3228 = verf.f32 %v606_v57  ;;  %v4202_v58 = vld [vmem:[%s3675_s4 + $0x3c8] sm:$0xff] }
  0x8f   : > { %v891_v63 = vadd.f32 1.0, %v3217_v49  ;;  %v603_v7 = vmul.f32 0.70710677, %v303_v50  ;;  %3230 = verf.f32 %v597_v61  ;;  %v443_v10 = vmul.f32 0.5, %v4122_v3  ;;  %v4179_v3 = vld [vmem:[%s3675_s4 + $0x3a8] sm:$0xff] }
  0x90   : > { %2708 = vmatpush1.bf16.msra.mxu1 %v3091_v14  ;;  %v3219_v8 = vpop.eup %3218  ;;  %1869 = vmatprep.mubr.bf16.mxu1 %v1144_v42  ;;  %v1146_v53 = vpack.c.bf16 %v1044_v55, %v1038_v59  ;;  %v1035_v9 = vmul.f32 %v885_v44, %v435_v51  ;;  %v599_v11 = vmul.f32 0.70710677, %v4165_v62  ;;  %v605_v17 = vmul.f32 0.70710677, %v305_v1  ;;  %v4206_v42 = vld [vmem:[%s3675_s4 + $0x3f8] sm:$0xff] }
  0x91   : > { %2120 = vmatpush1.bf16.msra.mxu0 %v3091_v14  ;;  %v3221_v13 = vpop.eup %3220  ;;  %v1041_v15 = vmul.f32 %v891_v63, %v441_v60  ;;  %v887_v16 = vadd.f32 1.0, %v3219_v8  ;;  %3232 = verf.f32 %v603_v7  ;;  %v448_v18 = vmul.f32 0.5, %v4139_v24  ;;  %v4209_v63 = vld [vmem:[%s3675_s4 + $0x3d8] sm:$0xff] }
  0x92   : > { %2030 = vmatprep.mubr.bf16.mxu0 %v1146_v53  ;;  %v893_v2 = vadd.f32 1.0, %v3221_v13  ;;  %v454_v20 = vmul.f32 0.5, %v4142_v4  ;;  %3234 = verf.f32 %v599_v11  ;;  %v610_v25 = vmul.f32 0.70710677, %v310_v12  ;;  %v4215_v13 = vld [vmem:[%s3675_s4 + $0x408] sm:$0xff] }
  0x93   : > { %v1143_v23 = vpack.c.bf16 %v1041_v15, %v1035_v9  ;;  %v1037_v6 = vmul.f32 %v887_v16, %v437_v5  ;;  %3236 = verf.f32 %v605_v17  ;;  %v450_v22 = vmul.f32 0.5, %v4149_v33 }
  0x94   : > { %v3223_v26 = vpop.eup %3222  ;;  %v1043_v14 = vmul.f32 %v893_v2, %v443_v10  ;;  %v456_v30 = vmul.f32 0.5, %v306_v47  ;;  %v616_v31 = vmul.f32 0.70710677, %v316_v0  ;;  %3238 = verf.f32 %v610_v25  ;;  %v4192_v47 = vld [vmem:[%s3675_s4 + $0x370] sm:$0xff] }
  0x95   : > { %v3225_v24 = vpop.eup %3224  ;;  %1870 = vmatmul.mubr.bf16.gmra.mrb[28].mxu1 %v1143_v23  ;;  %v898_v4 = vadd.f32 1.0, %v3223_v26  ;;  %v612_v38 = vmul.f32 0.70710677, %v4176_v21  ;;  %v618_v27 = vmul.f32 0.70710677, %v4179_v3  ;;  %v447_v33 = vmul.f32 0.5, %v4159_v52 }
  0x96   : > { %v3227_v41 = vpop.eup %3226  ;;  %v1145_v19 = vpack.c.bf16 %v1043_v14, %v1037_v6  ;;  %v904_v43 = vadd.f32 1.0, %v3225_v24  ;;  %3240 = verf.f32 %v616_v31  ;;  %v453_v46 = vmul.f32 0.5, %v303_v50  ;;  %v4220_v6 = vld [vmem:[%s3675_s4 + $0x3c0] sm:$0xff] }
  0x97   : > { %v1048_v45 = vmul.f32 %v898_v4, %v448_v18  ;;  %v900_v39 = vadd.f32 1.0, %v3227_v41  ;;  %3242 = verf.f32 %v612_v38  ;;  %v609_v51 = vmul.f32 0.70710677, %v4183_v35 }
  0x98   : > { %v3229_v28 = vpop.eup %3228  ;;  %2031 = vmatmul.mubr.bf16.gmra.mrb[28].mxu0 %v1145_v19  ;;  %v1054_v29 = vmul.f32 %v904_v43, %v454_v20  ;;  %3244 = verf.f32 %v618_v27  ;;  %v615_v34 = vmul.f32 0.70710677, %v4188_v40  ;;  %v449_v56 = vmul.f32 0.5, %v4165_v62  ;;  %v4230_v19 = vld [vmem:[%s3675_s4 + $0x3d0] sm:$0xff] }
  0x99   : > { %v3231_v52 = vpop.eup %3230  ;;  %v906_v54 = vadd.f32 1.0, %v3229_v28  ;;  %v1050_v36 = vmul.f32 %v900_v39, %v450_v22  ;;  %v455_v32 = vmul.f32 0.5, %v305_v1  ;;  %3246 = verf.f32 %v609_v51 }
  0x9a   : > { %v1150_v48 = vpack.c.bf16 %v1054_v29, %v1048_v45  ;;  %v897_v57 = vadd.f32 1.0, %v3231_v52  ;;  %v611_v50 = vmul.f32 0.70710677, %v4192_v47  ;;  %v460_v61 = vmul.f32 0.5, %v310_v12 }
  0x9b   : > { %v3233_v59 = vpop.eup %3232  ;;  %v1056_v60 = vmul.f32 %v906_v54, %v456_v30  ;;  %3248 = verf.f32 %v615_v34  ;;  %v617_v49 = vmul.f32 0.70710677, %v4197_v37  ;;  %v466_v1 = vmul.f32 0.5, %v316_v0  ;;  %v4239_v34 = vld [vmem:[%s3675_s4 + $0x428] sm:$0xff] }
  0x9c   : > { %v3235_v55 = vpop.eup %3234  ;;  %1879 = vmatprep.mubr.bf16.mxu1 %v1150_v48  ;;  %v903_v62 = vadd.f32 1.0, %v3233_v59  ;;  %v1047_v44 = vmul.f32 %v897_v57, %v447_v33  ;;  %3250 = verf.f32 %v611_v50  ;;  %v622_v53 = vmul.f32 0.70710677, %v4202_v58 }
  0x9d   : > { %v3237_v5 = vpop.eup %3236  ;;  %v1152_v7 = vpack.c.bf16 %v1056_v60, %v1050_v36  ;;  %v899_v8 = vadd.f32 1.0, %v3235_v55  ;;  %3252 = verf.f32 %v617_v49  ;;  %v462_v11 = vmul.f32 0.5, %v4176_v21  ;;  %v4249_v49 = vld [vmem:[%s3675_s4 + $0x438] sm:$0xff] }
  0x9e   : > { %v1053_v9 = vmul.f32 %v903_v62, %v453_v46  ;;  %v905_v10 = vadd.f32 1.0, %v3237_v5  ;;  %v628_v12 = vmul.f32 0.70710677, %v4206_v42  ;;  %v3239_v15 = vpop.eup %3238  ;;  %v468_v17 = vmul.f32 0.5, %v4179_v3  ;;  %v4225_v3 = vld [vmem:[%s3675_s4 + $0x3f0] sm:$0xff] }
  0x9f   : > { %2040 = vmatprep.mubr.bf16.mxu0 %v1152_v7  ;;  %v1049_v16 = vmul.f32 %v899_v8, %v449_v56  ;;  %3254 = verf.f32 %v622_v53  ;;  %v624_v0 = vmul.f32 0.70710677, %v4209_v63  ;;  %v910_v23 = vadd.f32 1.0, %v3239_v15  ;;  %v4260_v15 = vld [vmem:[%s3675_s4 + $0x420] sm:$0xff] }
  0xa0   : > { %v3241_v2 = vpop.eup %3240  ;;  %v1149_v18 = vpack.c.bf16 %v1053_v9, %v1047_v44  ;;  %v1055_v20 = vmul.f32 %v905_v10, %v455_v32  ;;  %3256 = verf.f32 %v628_v12  ;;  %v459_v26 = vmul.f32 0.5, %v4183_v35  ;;  %v4233_v35 = vld [vmem:[%s3675_s4 + $0x400] sm:$0xff] }
  0xa1   : > { %v3243_v21 = vpop.eup %3242  ;;  %v916_v25 = vadd.f32 1.0, %v3241_v2  ;;  %v630_v14 = vmul.f32 0.70710677, %v4215_v13  ;;  %3258 = verf.f32 %v624_v0  ;;  %v1060_v31 = vmul.f32 %v910_v23, %v460_v61  ;;  %v4263_v2 = vld [vmem:[%s3675_s4 + $0x450] sm:$0xff] }
  0xa2   : > { %v3245_v22 = vpop.eup %3244  ;;  %1880 = vmatmul.mubr.bf16.gmra.mrb[32].mxu1 %v1149_v18  ;;  %v1151_v30 = vpack.c.bf16 %v1055_v20, %v1049_v16  ;;  %v912_v24 = vadd.f32 1.0, %v3243_v21  ;;  %v465_v4 = vmul.f32 0.5, %v4188_v40  ;;  %v621_v41 = vmul.f32 0.70710677, %v4220_v6 }
  0xa3   : > { %v1066_v38 = vmul.f32 %v916_v25, %v466_v1  ;;  %v918_v27 = vadd.f32 1.0, %v3245_v22  ;;  %3260 = verf.f32 %v630_v14  ;;  %v3247_v43 = vpop.eup %3246  ;;  %v461_v45 = vmul.f32 0.5, %v4192_v47  ;;  %v4244_v47 = vld [vmem:[%s3675_s4 + $0x458] sm:$0xff]  ;;  %v4270_v14 = vld [vmem:[%s3675_s4 + $0x430] sm:$0xff]  ;;  %v4273_v22 = vld [vmem:[%s3675_s4 + $0x460] sm:$0xff] }
  0xa4   : > { %2041 = vmatmul.mubr.bf16.gmra.mrb[32].mxu0 %v1151_v30  ;;  %v1062_v33 = vmul.f32 %v912_v24, %v462_v11  ;;  %v467_v39 = vmul.f32 0.5, %v4197_v37  ;;  %v627_v40 = vmul.f32 0.70710677, %v4225_v3  ;;  %v909_v51 = vadd.f32 1.0, %v3247_v43 }
  0xa5   : > { %v3249_v46 = vpop.eup %3248  ;;  %v1156_v28 = vpack.c.bf16 %v1066_v38, %v1060_v31  ;;  %v1068_v29 = vmul.f32 %v918_v27, %v468_v17  ;;  %3262 = verf.f32 %v621_v41  ;;  %v623_v36 = vmul.f32 0.70710677, %v4230_v19 }
  0xa6   : > { %v3251_v52 = vpop.eup %3250  ;;  %v915_v54 = vadd.f32 1.0, %v3249_v46  ;;  %3264 = verf.f32 %v627_v40  ;;  %v629_v56 = vmul.f32 0.70710677, %v4233_v35  ;;  %v1059_v48 = vmul.f32 %v909_v51, %v459_v26  ;;  %v4289_v51 = vld [vmem:[%s3675_s4 + $0x480] sm:$0xff] }
  0xa7   : > { %v3253_v37 = vpop.eup %3252  ;;  %1889 = vmatprep.mubr.bf16.mxu1 %v1156_v28  ;;  %v1158_v32 = vpack.c.bf16 %v1068_v29, %v1062_v33  ;;  %v911_v57 = vadd.f32 1.0, %v3251_v52  ;;  %v472_v50 = vmul.f32 0.5, %v4202_v58  ;;  %v478_v61 = vmul.f32 0.5, %v4206_v42  ;;  %v4255_v42 = vld [vmem:[%s3675_s4 + $0x468] sm:$0xff] }
  0xa8   : > { %v1065_v59 = vmul.f32 %v915_v54, %v465_v4  ;;  %v917_v60 = vadd.f32 1.0, %v3253_v37  ;;  %3266 = verf.f32 %v623_v36  ;;  %v634_v44 = vmul.f32 0.70710677, %v4239_v34  ;;  %v4278_v4 = vld [vmem:[%s3675_s4 + $0x488] sm:$0xff] }
  0xa9   : > { %v3255_v55 = vpop.eup %3254  ;;  %2050 = vmatprep.mubr.bf16.mxu0 %v1158_v32  ;;  %v1061_v62 = vmul.f32 %v911_v57, %v461_v45  ;;  %3268 = verf.f32 %v629_v56  ;;  %v640_v1 = vmul.f32 0.70710677, %v4244_v47  ;;  %v474_v53 = vmul.f32 0.5, %v4209_v63 }
  0xaa   : > { %v3257_v5 = vpop.eup %3256  ;;  %v1155_v7 = vpack.c.bf16 %v1065_v59, %v1059_v48  ;;  %v1067_v58 = vmul.f32 %v917_v60, %v467_v39  ;;  %v922_v8 = vadd.f32 1.0, %v3255_v55  ;;  %v480_v11 = vmul.f32 0.5, %v4215_v13 }
  0xab   : > { %v3259_v9 = vpop.eup %3258  ;;  %v928_v10 = vadd.f32 1.0, %v3257_v5  ;;  %3270 = verf.f32 %v634_v44  ;;  %v636_v12 = vmul.f32 0.70710677, %v4249_v49  ;;  %v471_v20 = vmul.f32 0.5, %v4220_v6 }
  0xac   : > { %1890 = vmatmul.mubr.bf16.gmra.mrb[36].mxu1 %v1155_v7  ;;  %v1157_v16 = vpack.c.bf16 %v1067_v58, %v1061_v62  ;;  %v1072_v17 = vmul.f32 %v922_v8, %v472_v50  ;;  %v924_v0 = vadd.f32 1.0, %v3259_v9  ;;  %3272 = verf.f32 %v640_v1  ;;  %v4300_v62 = vld [vmem:[%s3675_s4 + $0x28] sm:$0xff] }
  0xad   : > { %v3261_v63 = vpop.eup %3260  ;;  %v1078_v18 = vmul.f32 %v928_v10, %v478_v61  ;;  %v642_v13 = vmul.f32 0.70710677, %v4255_v42  ;;  %3274 = verf.f32 %v636_v12  ;;  %v477_v25 = vmul.f32 0.5, %v4225_v3 }
  0xae   : > { %2051 = vmatmul.mubr.bf16.gmra.mrb[36].mxu0 %v1157_v16  ;;  %v930_v23 = vadd.f32 1.0, %v3261_v63  ;;  %v1074_v21 = vmul.f32 %v924_v0, %v474_v53  ;;  %v633_v26 = vmul.f32 0.70710677, %v4260_v15  ;;  %v473_v24 = vmul.f32 0.5, %v4230_v19  ;;  %v4284_v19 = vld [vmem:[%s3675_s4 + $0x498] sm:$0xff] }
  0xaf   : > { %v3263_v30 = vpop.eup %3262  ;;  %v1162_v31 = vpack.c.bf16 %v1078_v18, %v1072_v17  ;;  %3276 = verf.f32 %v642_v13  ;;  %v639_v6 = vmul.f32 0.70710677, %v4263_v2  ;;  %v479_v41 = vmul.f32 0.5, %v4233_v35  ;;  %v4314_v17 = vld [vmem:[%s3675_s4 + $0x2f8] sm:$0xff] }
  0xb0   : > { %v3265_v38 = vpop.eup %3264  ;;  %v1080_v27 = vmul.f32 %v930_v23, %v480_v11  ;;  %v921_v3 = vadd.f32 1.0, %v3263_v30  ;;  %3278 = verf.f32 %v633_v26  ;;  %v635_v33 = vmul.f32 0.70710677, %v4270_v14 }
  0xb1   : > { %1899 = vmatprep.mubr.bf16.mxu1 %v1162_v31  ;;  %v927_v43 = vadd.f32 1.0, %v3265_v38  ;;  %3280 = verf.f32 %v639_v6  ;;  %v641_v45 = vmul.f32 0.70710677, %v4273_v22  ;;  %v484_v28 = vmul.f32 0.5, %v4239_v34  ;;  %v4295_v34 = vld [vmem:[%s3675_s4 + $0x490] sm:$0xff]  ;;  %v4321_v31 = vld [vmem:[%s3675_s4 + $0x20] sm:$0xff] }
  0xb2   : > { %v3267_v39 = vpop.eup %3266  ;;  %v1164_v40 = vpack.c.bf16 %v1080_v27, %v1074_v21  ;;  %v1071_v46 = vmul.f32 %v921_v3, %v471_v20  ;;  %v646_v29 = vmul.f32 0.70710677, %v4278_v4  ;;  %v490_v36 = vmul.f32 0.5, %v4244_v47 }
  0xb3   : > { %v3269_v35 = vpop.eup %3268  ;;  %v1077_v52 = vmul.f32 %v927_v43, %v477_v25  ;;  %v923_v54 = vadd.f32 1.0, %v3267_v39  ;;  %3282 = verf.f32 %v635_v33  ;;  %v486_v37 = vmul.f32 0.5, %v4249_v49  ;;  %v4303_v49 = vld [vmem:[%s3675_s4 + $0x58] sm:$0xff]  ;;  %v4329_v33 = vld [vmem:[%s3675_s4 + $0x2c0] sm:$0xff] }
  0xb4   : > { %2060 = vmatprep.mubr.bf16.mxu0 %v1164_v40  ;;  %v929_v56 = vadd.f32 1.0, %v3269_v35  ;;  %3284 = verf.f32 %v641_v45  ;;  %v648_v32 = vmul.f32 0.70710677, %v4284_v19  ;;  %v645_v59 = vmul.f32 0.70710677, %v4289_v51  ;;  %v4332_v45 = vld [vmem:[%s3675_s4 + $0x2f0] sm:$0xff] }
  0xb5   : > { %v3271_v48 = vpop.eup %3270  ;;  %v1161_v57 = vpack.c.bf16 %v1077_v52, %v1071_v46  ;;  %v1073_v50 = vmul.f32 %v923_v54, %v473_v24  ;;  %3286 = verf.f32 %v646_v29  ;;  %v492_v55 = vmul.f32 0.5, %v4255_v42  ;;  %v4309_v42 = vld [vmem:[%s3675_s4 + $0x2c8] sm:$0xff]  ;;  %v4324_v24 = vld [vmem:[%s3675_s4 + $0x50] sm:$0xff] }
  0xb6   : > { %v3273_v60 = vpop.eup %3272  ;;  %v1079_v47 = vmul.f32 %v929_v56, %v479_v41  ;;  %v934_v61 = vadd.f32 1.0, %v3271_v48  ;;  %3288 = verf.f32 %v648_v32  ;;  %v483_v5 = vmul.f32 0.5, %v4260_v15 }
  0xb7   : > { %v3275_v44 = vpop.eup %3274  ;;  %1900 = vmatmul.mubr.bf16.gmra.mrb[40].mxu1 %v1161_v57  ;;  %v940_v1 = vadd.f32 1.0, %v3273_v60  ;;  %3290 = verf.f32 %v645_v59  ;;  %v647_v7 = vmul.f32 0.70710677, %v4295_v34  ;;  %v489_v9 = vmul.f32 0.5, %v4263_v2  ;;  %v4344_v59 = vld [vmem:[%s3675_s4 + $0xb8] sm:$0xff] }
  0xb8   : > { %v1163_v58 = vpack.c.bf16 %v1079_v47, %v1073_v50  ;;  %v1084_v8 = vmul.f32 %v934_v61, %v484_v28  ;;  %v936_v53 = vadd.f32 1.0, %v3275_v44  ;;  %v506_v12 = vmul.f32 0.70710677, %v4300_v62  ;;  %v4341_v50 = vld [vmem:[%s3675_s4 + $0x88] sm:$0xff] }
  0xb9   : > { %v3277_v10 = vpop.eup %3276  ;;  %v1090_v11 = vmul.f32 %v940_v1, %v490_v36  ;;  %3292 = verf.f32 %v647_v7  ;;  %v512_v16 = vmul.f32 0.70710677, %v4303_v49  ;;  %v485_v18 = vmul.f32 0.5, %v4270_v14 }
  0xba   : > { %v3279_v15 = vpop.eup %3278  ;;  %2061 = vmatmul.mubr.bf16.gmra.mrb[40].mxu0 %v1163_v58  ;;  %v942_v0 = vadd.f32 1.0, %v3277_v10  ;;  %v1086_v63 = vmul.f32 %v936_v53, %v486_v37  ;;  %v491_v2 = vmul.f32 0.5, %v4273_v22  ;;  %3294 = verf.f32 %v506_v12 }
  0xbb   : > { %v3281_v20 = vpop.eup %3280  ;;  %v1168_v13 = vpack.c.bf16 %v1090_v11, %v1084_v8  ;;  %v933_v23 = vadd.f32 1.0, %v3279_v15  ;;  %v590_v21 = vmul.f32 0.70710677, %v4309_v42  ;;  %3296 = verf.f32 %v512_v16  ;;  %v4355_v15 = vld [vmem:[%s3675_s4 + $0x358] sm:$0xff] }
  0xbc   : > { %v1092_v25 = vmul.f32 %v942_v0, %v492_v55  ;;  %v939_v26 = vadd.f32 1.0, %v3281_v20  ;;  %v596_v30 = vmul.f32 0.70710677, %v4314_v17  ;;  %v496_v6 = vmul.f32 0.5, %v4278_v4 }
  0xbd   : > { %v3283_v14 = vpop.eup %3282  ;;  %1909 = vmatprep.mubr.bf16.mxu1 %v1168_v13  ;;  %v1083_v22 = vmul.f32 %v933_v23, %v483_v5  ;;  %v498_v38 = vmul.f32 0.5, %v4284_v19  ;;  %3298 = verf.f32 %v590_v21  ;;  %v495_v46 = vmul.f32 0.5, %v4289_v51  ;;  %v4348_v5 = vld [vmem:[%s3675_s4 + $0x328] sm:$0xff] }
  0xbe   : > { %v3285_v27 = vpop.eup %3284  ;;  %v1170_v3 = vpack.c.bf16 %v1092_v25, %v1086_v63  ;;  %v1089_v41 = vmul.f32 %v939_v26, %v489_v9  ;;  %v935_v43 = vadd.f32 1.0, %v3283_v14  ;;  %3300 = verf.f32 %v596_v30  ;;  %v4363_v25 = vld [vmem:[%s3675_s4 + $0xb0] sm:$0xff] }
  0xbf   : > { %v3287_v39 = vpop.eup %3286  ;;  %v941_v40 = vadd.f32 1.0, %v3285_v27  ;;  %v505_v28 = vmul.f32 0.70710677, %v4321_v31  ;;  %v511_v4 = vmul.f32 0.70710677, %v4324_v24  ;;  %v497_v54 = vmul.f32 0.5, %v4295_v34 }
  0xc0   : > { %v3289_v29 = vpop.eup %3288  ;;  %2070 = vmatprep.mubr.bf16.mxu0 %v1170_v3  ;;  %v1167_v19 = vpack.c.bf16 %v1089_v41, %v1083_v22  ;;  %v1085_v35 = vmul.f32 %v935_v43, %v485_v18  ;;  %v946_v52 = vadd.f32 1.0, %v3287_v39  ;;  %v589_v32 = vmul.f32 0.70710677, %v4329_v33  ;;  %v4374_v39 = vld [vmem:[%s3675_s4 + $0x350] sm:$0xff] }
  0xc1   : > { %v3291_v36 = vpop.eup %3290  ;;  %v1091_v56 = vmul.f32 %v941_v40, %v491_v2  ;;  %v948_v37 = vadd.f32 1.0, %v3289_v29  ;;  %3302 = verf.f32 %v505_v28  ;;  %v595_v57 = vmul.f32 0.70710677, %v4332_v45  ;;  %v4360_v2 = vld [vmem:[%s3675_s4 + $0x80] sm:$0xff] }
  0xc2   : > { %1910 = vmatmul.mubr.bf16.gmra.mrb[44].mxu1 %v1167_v19  ;;  %v1096_v51 = vmul.f32 %v946_v52, %v496_v6  ;;  %v945_v48 = vadd.f32 1.0, %v3291_v36  ;;  %3304 = verf.f32 %v511_v4  ;;  %v356_v61 = vmul.f32 0.5, %v4300_v62  ;;  %v4383_v52 = vld [vmem:[%s3675_s4 + $0x118] sm:$0xff] }
  0xc3   : > { %v3293_v60 = vpop.eup %3292  ;;  %v1169_v47 = vpack.c.bf16 %v1091_v56, %v1085_v35  ;;  %v1098_v34 = vmul.f32 %v948_v37, %v498_v38  ;;  %3306 = verf.f32 %v589_v32  ;;  %v362_v8 = vmul.f32 0.5, %v4303_v49  ;;  %v4370_v38 = vld [vmem:[%s3675_s4 + $0x320] sm:$0xff]  ;;  %v4380_v35 = vld [vmem:[%s3675_s4 + $0xe8] sm:$0xff] }
  0xc4   : > { %v1174_v55 = vpack.c.bf16 %v1096_v51, %v1096_v51  ;;  %v1095_v44 = vmul.f32 %v945_v48, %v495_v46  ;;  %v947_v1 = vadd.f32 1.0, %v3293_v60  ;;  %3308 = verf.f32 %v595_v57  ;;  %v3295_v7 = vpop.eup %3294  ;;  %v4389_v48 = vld [vmem:[%s3675_s4 + $0x388] sm:$0xff]  ;;  %v4392_v57 = vld [vmem:[%s3675_s4 + $0x3b8] sm:$0xff] }
  0xc5   : > { %2071 = vmatmul.mubr.bf16.gmra.mrb[44].mxu0 %v1169_v47  ;;  %v1176_v58 = vpack.c.bf16 %v1098_v34, %v1098_v34  ;;  %v518_v53 = vmul.f32 0.70710677, %v4341_v50  ;;  %v524_v9 = vmul.f32 0.70710677, %v4344_v59  ;;  %v3297_v10 = vpop.eup %3296  ;;  %v806_v12 = vadd.f32 1.0, %v3295_v7 }
  0xc6   : > { %1919 = vmatprep.mubr.bf16.mxu1 %v1174_v55  ;;  %v1173_v62 = vpack.c.bf16 %v1095_v44, %v1095_v44  ;;  %v1097_v11 = vmul.f32 %v947_v1, %v497_v54  ;;  %v440_v16 = vmul.f32 0.5, %v4309_v42  ;;  %v812_v63 = vadd.f32 1.0, %v3297_v10 }
  0xc7   : > { %v3299_v0 = vpop.eup %3298  ;;  %2080 = vmatprep.mubr.bf16.mxu0 %v1176_v58  ;;  %v446_v49 = vmul.f32 0.5, %v4314_v17  ;;  %3310 = verf.f32 %v518_v53  ;;  %v602_v18 = vmul.f32 0.70710677, %v4348_v5  ;;  %v956_v23 = vmul.f32 %v806_v12, %v356_v61 }
  0xc8   : > { %v3301_v20 = vpop.eup %3300  ;;  %v1175_v13 = vpack.c.bf16 %v1097_v11, %v1097_v11  ;;  %v890_v21 = vadd.f32 1.0, %v3299_v0  ;;  %3312 = verf.f32 %v524_v9  ;;  %v962_v42 = vmul.f32 %v812_v63, %v362_v8  ;;  %v4404_v9 = vld [vmem:[%s3675_s4 + $0x110] sm:$0xff]  ;;  %v4409_v0 = vld [vmem:[%s3675_s4 + $0x380] sm:$0xff] }
  0xc9   : > { %v896_v26 = vadd.f32 1.0, %v3301_v20  ;;  %v608_v30 = vmul.f32 0.70710677, %v4355_v15  ;;  %3314 = verf.f32 %v602_v18  ;;  %v355_v14 = vmul.f32 0.5, %v4321_v31 }
  0xca   : > { %1920 = vmatmul.mubr.bf16.gmra.mrb[48].mxu1 %v1173_v62  ;;  %v1040_v17 = vmul.f32 %v890_v21, %v440_v16  ;;  %v361_v22 = vmul.f32 0.5, %v4324_v24  ;;  %v517_v6 = vmul.f32 0.70710677, %v4360_v2  ;;  %v1106_v3 = vpack.c.bf16 %v962_v42, %v956_v23 }
  0xcb   : > { %v3303_v27 = vpop.eup %3302  ;;  %v1046_v41 = vmul.f32 %v896_v26, %v446_v49  ;;  %3316 = verf.f32 %v608_v30  ;;  %v523_v43 = vmul.f32 0.70710677, %v4363_v25  ;;  %v439_v31 = vmul.f32 0.5, %v4329_v33 }
  0xcc   : > { %v3305_v40 = vpop.eup %3304  ;;  %v805_v46 = vadd.f32 1.0, %v3303_v27  ;;  %v445_v24 = vmul.f32 0.5, %v4332_v45  ;;  %3318 = verf.f32 %v517_v6  ;;  %v601_v19 = vmul.f32 0.70710677, %v4370_v38 }
  0xcd   : > { %v3307_v28 = vpop.eup %3306  ;;  %2081 = vmatmul.mubr.bf16.gmra.mrb[48].mxu0 %v1175_v13  ;;  %v1148_v4 = vpack.c.bf16 %v1046_v41, %v1040_v17  ;;  %v811_v29 = vadd.f32 1.0, %v3305_v40  ;;  %3320 = verf.f32 %v523_v43  ;;  %v368_v45 = vmul.f32 0.5, %v4341_v50  ;;  %v4414_v13 = vld [vmem:[%s3675_s4 + $0x3b0] sm:$0xff]  ;;  %v4424_v41 = vld [vmem:[%s3675_s4 + $0x178] sm:$0xff] }
  0xce   : > { %v3309_v54 = vpop.eup %3308  ;;  %2121 = vmatprep.mubr.bf16.mxu0 %v1106_v3  ;;  %v955_v36 = vmul.f32 %v805_v46, %v355_v14  ;;  %v889_v33 = vadd.f32 1.0, %v3307_v28  ;;  %v607_v56 = vmul.f32 0.70710677, %v4374_v39  ;;  %v374_v51 = vmul.f32 0.5, %v4344_v59  ;;  %v4399_v59 = vld [vmem:[%s3675_s4 + $0xe0] sm:$0xff]  ;;  %v4421_v3 = vld [vmem:[%s3675_s4 + $0x148] sm:$0xff] }
  0xcf   : > { %2191 = vmatprep.mubr.bf16.mxu1 %v1148_v4  ;;  %v961_v37 = vmul.f32 %v811_v29, %v361_v22  ;;  %v895_v32 = vadd.f32 1.0, %v3309_v54  ;;  %3322 = verf.f32 %v601_v19  ;;  %v530_v47 = vmul.f32 0.70710677, %v4380_v35  ;;  %v4429_v46 = vld [vmem:[%s3675_s4 + $0x3e8] sm:$0xff]  ;;  %v4432_v29 = vld [vmem:[%s3675_s4 + $0x418] sm:$0xff] }
  0xd0   : > { %v1039_v60 = vmul.f32 %v889_v33, %v439_v31  ;;  %3324 = verf.f32 %v607_v56  ;;  %v536_v50 = vmul.f32 0.70710677, %v4383_v52  ;;  %v452_v44 = vmul.f32 0.5, %v4348_v5 }
  0xd1   : > { %v3311_v34 = vpop.eup %3310  ;;  %v1105_v61 = vpack.c.bf16 %v961_v37, %v955_v36  ;;  %v1045_v55 = vmul.f32 %v895_v32, %v445_v24  ;;  %v458_v1 = vmul.f32 0.5, %v4355_v15  ;;  %3326 = verf.f32 %v530_v47 }
  0xd2   : > { %v3313_v7 = vpop.eup %3312  ;;  %v818_v58 = vadd.f32 1.0, %v3311_v34  ;;  %v614_v8 = vmul.f32 0.70710677, %v4389_v48  ;;  %v620_v53 = vmul.f32 0.70710677, %v4392_v57  ;;  %v367_v5 = vmul.f32 0.5, %v4360_v2 }
  0xd3   : > { %v3315_v10 = vpop.eup %3314  ;;  %v1147_v62 = vpack.c.bf16 %v1045_v55, %v1039_v60  ;;  %v824_v11 = vadd.f32 1.0, %v3313_v7  ;;  %3328 = verf.f32 %v536_v50  ;;  %v373_v15 = vmul.f32 0.5, %v4363_v25 }
  0xd4   : > { %v968_v12 = vmul.f32 %v818_v58, %v368_v45  ;;  %v902_v16 = vadd.f32 1.0, %v3315_v10  ;;  %3330 = verf.f32 %v614_v8  ;;  %v529_v18 = vmul.f32 0.70710677, %v4399_v59 }
  0xd5   : > { %v3317_v63 = vpop.eup %3316  ;;  %2122 = vmatmul.mubr.bf16.vlgmr.msra.gmra.mrb[0].mxu0 %v1105_v61  ;;  %2192 = vmatmul.mubr.bf16.vlgmr.msra.gmra.mrb[52].mxu1 %v1147_v62  ;;  %v974_v49 = vmul.f32 %v824_v11, %v374_v51  ;;  %3332 = verf.f32 %v620_v53  ;;  %v535_v20 = vmul.f32 0.70710677, %v4404_v9  ;;  %v451_v25 = vmul.f32 0.5, %v4370_v38  ;;  %v4450_v62 = vld [vmem:[%s3675_s4 + $0x3e0] sm:$0xff]  ;;  %v4453_v11 = vld [vmem:[%s3675_s4 + $0x410] sm:$0xff] }
  0xd6   : > { %v3319_v2 = vpop.eup %3318  ;;  %v908_v23 = vadd.f32 1.0, %v3317_v63  ;;  %v1052_v21 = vmul.f32 %v902_v16, %v452_v44  ;;  %v457_v42 = vmul.f32 0.5, %v4374_v39  ;;  %3334 = verf.f32 %v529_v18 }
  0xd7   : > { %v3321_v26 = vpop.eup %3320  ;;  %v1112_v30 = vpack.c.bf16 %v974_v49, %v968_v12  ;;  %v817_v17 = vadd.f32 1.0, %v3319_v2  ;;  %v613_v14 = vmul.f32 0.70710677, %v4409_v0  ;;  %3336 = verf.f32 %v535_v20  ;;  %v4459_v20 = vld [vmem:[%s3675_s4 + $0x1a8] sm:$0xff] }
  0xd8   : > { %v1058_v22 = vmul.f32 %v908_v23, %v458_v1  ;;  %v823_v6 = vadd.f32 1.0, %v3321_v26  ;;  %v619_v27 = vmul.f32 0.70710677, %v4414_v13  ;;  %v380_v39 = vmul.f32 0.5, %v4380_v35 }
  0xd9   : > { %v3323_v38 = vpop.eup %3322  ;;  %2131 = vmatprep.mubr.bf16.mxu0 %v1112_v30  ;;  %v967_v43 = vmul.f32 %v817_v17, %v367_v5  ;;  %v386_v40 = vmul.f32 0.5, %v4383_v52  ;;  %3338 = verf.f32 %v613_v14  ;;  %v464_v54 = vmul.f32 0.5, %v4389_v48  ;;  %v4441_v48 = vld [vmem:[%s3675_s4 + $0x140] sm:$0xff] }
  0xda   : > { %v3325_v31 = vpop.eup %3324  ;;  %v1154_v24 = vpack.c.bf16 %v1058_v22, %v1052_v21  ;;  %v973_v28 = vmul.f32 %v823_v6, %v373_v15  ;;  %v901_v4 = vadd.f32 1.0, %v3323_v38  ;;  %3340 = verf.f32 %v619_v27  ;;  %v4469_v27 = vld [vmem:[%s3675_s4 + $0x448] sm:$0xff]  ;;  %v4472_v38 = vld [vmem:[%s3675_s4 + $0x478] sm:$0xff] }
  0xdb   : > { %v907_v19 = vadd.f32 1.0, %v3325_v31  ;;  %v542_v36 = vmul.f32 0.70710677, %v4421_v3  ;;  %v548_v35 = vmul.f32 0.70710677, %v4424_v41  ;;  %v3327_v33 = vpop.eup %3326  ;;  %v470_v56 = vmul.f32 0.5, %v4392_v57 }
  0xdc   : > { %2201 = vmatprep.mubr.bf16.mxu1 %v1154_v24  ;;  %v1111_v52 = vpack.c.bf16 %v973_v28, %v967_v43  ;;  %v1051_v45 = vmul.f32 %v901_v4, %v451_v25  ;;  %v626_v37 = vmul.f32 0.70710677, %v4429_v46  ;;  %v830_v60 = vadd.f32 1.0, %v3327_v33  ;;  %v4446_v57 = vld [vmem:[%s3675_s4 + $0x170] sm:$0xff]  ;;  %v4464_v25 = vld [vmem:[%s3675_s4 + $0x1d8] sm:$0xff] }
  0xdd   : > { %v3329_v32 = vpop.eup %3328  ;;  %v1057_v51 = vmul.f32 %v907_v19, %v457_v42  ;;  %3342 = verf.f32 %v542_v36  ;;  %v632_v47 = vmul.f32 0.70710677, %v4432_v29  ;;  %v379_v61 = vmul.f32 0.5, %v4399_v59 }
  0xde   : > { %v3331_v50 = vpop.eup %3330  ;;  %2132 = vmatmul.mubr.bf16.gmra.mrb[4].mxu0 %v1111_v52  ;;  %v836_v34 = vadd.f32 1.0, %v3329_v32  ;;  %v385_v55 = vmul.f32 0.5, %v4404_v9  ;;  %3344 = verf.f32 %v548_v35  ;;  %v980_v7 = vmul.f32 %v830_v60, %v380_v39  ;;  %v4481_v35 = vld [vmem:[%s3675_s4 + $0x1a0] sm:$0xff] }
  0xdf   : > { %v3333_v44 = vpop.eup %3332  ;;  %v1153_v1 = vpack.c.bf16 %v1057_v51, %v1051_v45  ;;  %v914_v58 = vadd.f32 1.0, %v3331_v50  ;;  %3346 = verf.f32 %v626_v37  ;;  %v541_v10 = vmul.f32 0.70710677, %v4441_v48 }
  0xe0   : > { %v986_v8 = vmul.f32 %v836_v34, %v386_v40  ;;  %v920_v53 = vadd.f32 1.0, %v3333_v44  ;;  %3348 = verf.f32 %v632_v47  ;;  %v3335_v59 = vpop.eup %3334  ;;  %v463_v5 = vmul.f32 0.5, %v4409_v0  ;;  %v4490_v34 = vld [vmem:[%s3675_s4 + $0x440] sm:$0xff] }
  0xe1   : > { %2202 = vmatmul.mubr.bf16.gmra.mrb[56].mxu1 %v1153_v1  ;;  %v1064_v9 = vmul.f32 %v914_v58, %v464_v54  ;;  %v469_v12 = vmul.f32 0.5, %v4414_v13  ;;  %v547_v16 = vmul.f32 0.70710677, %v4446_v57  ;;  %v3337_v15 = vpop.eup %3336  ;;  %v829_v18 = vadd.f32 1.0, %v3335_v59 }
  0xe2   : > { %v1118_v63 = vpack.c.bf16 %v986_v8, %v980_v7  ;;  %v1070_v49 = vmul.f32 %v920_v53, %v470_v56  ;;  %3350 = verf.f32 %v541_v10  ;;  %v835_v23 = vadd.f32 1.0, %v3337_v15  ;;  %v4499_v10 = vld [vmem:[%s3675_s4 + $0x208] sm:$0xff] }
  0xe3   : > { %v3339_v2 = vpop.eup %3338  ;;  %3352 = verf.f32 %v547_v16  ;;  %v625_v21 = vmul.f32 0.70710677, %v4450_v62  ;;  %v631_v0 = vmul.f32 0.70710677, %v4453_v11  ;;  %v979_v26 = vmul.f32 %v829_v18, %v379_v61  ;;  %v4493_v61 = vld [vmem:[%s3675_s4 + $0x470] sm:$0xff] }
  0xe4   : > { %v3341_v13 = vpop.eup %3340  ;;  %2141 = vmatprep.mubr.bf16.mxu0 %v1118_v63  ;;  %v1160_v42 = vpack.c.bf16 %v1070_v49, %v1064_v9  ;;  %v913_v30 = vadd.f32 1.0, %v3339_v2  ;;  %v392_v17 = vmul.f32 0.5, %v4421_v3  ;;  %v985_v14 = vmul.f32 %v835_v23, %v385_v55  ;;  %v4509_v49 = vld [vmem:[%s3675_s4 + $0x4a8] sm:$0xff] }
  0xe5   : > { %v919_v22 = vadd.f32 1.0, %v3341_v13  ;;  %v398_v6 = vmul.f32 0.5, %v4424_v41  ;;  %3354 = verf.f32 %v625_v21  ;;  %v554_v39 = vmul.f32 0.70710677, %v4459_v20 }
  0xe6   : > { %2211 = vmatprep.mubr.bf16.mxu1 %v1160_v42  ;;  %v1063_v43 = vmul.f32 %v913_v30, %v463_v5  ;;  %3356 = verf.f32 %v631_v0  ;;  %v560_v40 = vmul.f32 0.70710677, %v4464_v25  ;;  %v1117_v24 = vpack.c.bf16 %v985_v14, %v979_v26  ;;  %v4515_v26 = vld [vmem:[%s3675_s4 + $0x200] sm:$0xff]  ;;  %v4519_v14 = vld [vmem:[%s3675_s4 + $0x230] sm:$0xff] }
  0xe7   : > { %v3343_v31 = vpop.eup %3342  ;;  %v1069_v3 = vmul.f32 %v919_v22, %v469_v12  ;;  %v476_v28 = vmul.f32 0.5, %v4429_v46  ;;  %v482_v41 = vmul.f32 0.5, %v4432_v29  ;;  %3358 = verf.f32 %v554_v39  ;;  %v4485_v46 = vld [vmem:[%s3675_s4 + $0x1d0] sm:$0xff]  ;;  %v4504_v12 = vld [vmem:[%s3675_s4 + $0x238] sm:$0xff] }
  0xe8   : > { %v3345_v4 = vpop.eup %3344  ;;  %v842_v19 = vadd.f32 1.0, %v3343_v31  ;;  %v638_v54 = vmul.f32 0.70710677, %v4469_v27  ;;  %v644_v36 = vmul.f32 0.70710677, %v4472_v38  ;;  %2142 = vmatmul.mubr.bf16.gmra.mrb[8].mxu0 %v1117_v24  ;;  %v391_v56 = vmul.f32 0.5, %v4441_v48 }
  0xe9   : > { %v3347_v33 = vpop.eup %3346  ;;  %v1159_v52 = vpack.c.bf16 %v1069_v3, %v1063_v43  ;;  %v848_v45 = vadd.f32 1.0, %v3345_v4  ;;  %3360 = verf.f32 %v560_v40  ;;  %v397_v51 = vmul.f32 0.5, %v4446_v57  ;;  %v4525_v3 = vld [vmem:[%s3675_s4 + $0x4a0] sm:$0xff] }
  0xea   : > { %v3349_v29 = vpop.eup %3348  ;;  %v992_v37 = vmul.f32 %v842_v19, %v392_v17  ;;  %v926_v32 = vadd.f32 1.0, %v3347_v33  ;;  %3362 = verf.f32 %v638_v54  ;;  %v553_v50 = vmul.f32 0.70710677, %v4481_v35 }
  0xeb   : > { %2212 = vmatmul.mubr.bf16.gmra.mrb[60].mxu1 %v1159_v52  ;;  %v998_v60 = vmul.f32 %v848_v45, %v398_v6  ;;  %v932_v47 = vadd.f32 1.0, %v3349_v29  ;;  %3364 = verf.f32 %v644_v36  ;;  %v475_v44 = vmul.f32 0.5, %v4450_v62  ;;  %v4530_v52 = vld [vmem:[%s3675_s4 + $0x268] sm:$0xff] }
  0xec   : > { %v3351_v48 = vpop.eup %3350  ;;  %v1076_v55 = vmul.f32 %v926_v32, %v476_v28  ;;  %v481_v1 = vmul.f32 0.5, %v4453_v11  ;;  %v559_v57 = vmul.f32 0.70710677, %v4485_v46  ;;  %3366 = verf.f32 %v553_v50  ;;  %v277_v50 = vld [vmem:[%s3675_s4 + $0x260] sm:$0xff] }
  0xed   : > { %v3353_v7 = vpop.eup %3352  ;;  %v1124_v58 = vpack.c.bf16 %v998_v60, %v992_v37  ;;  %v1082_v8 = vmul.f32 %v932_v47, %v482_v41  ;;  %v841_v53 = vadd.f32 1.0, %v3351_v48  ;;  %v637_v9 = vmul.f32 0.70710677, %v4490_v34 }
  0xee   : > { %v847_v59 = vadd.f32 1.0, %v3353_v7  ;;  %3368 = verf.f32 %v559_v57  ;;  %v643_v5 = vmul.f32 0.70710677, %v4493_v61  ;;  %v404_v15 = vmul.f32 0.5, %v4459_v20 }
  0xef   : > { %v3355_v62 = vpop.eup %3354  ;;  %2151 = vmatprep.mubr.bf16.mxu0 %v1124_v58  ;;  %v1166_v11 = vpack.c.bf16 %v1082_v8, %v1076_v55  ;;  %v991_v16 = vmul.f32 %v841_v53, %v391_v56  ;;  %v410_v63 = vmul.f32 0.5, %v4464_v25  ;;  %3370 = verf.f32 %v637_v9 }
  0xf0   : > { %v3357_v18 = vpop.eup %3356  ;;  %v997_v2 = vmul.f32 %v847_v59, %v397_v51  ;;  %v925_v23 = vadd.f32 1.0, %v3355_v62  ;;  %v566_v21 = vmul.f32 0.70710677, %v4499_v10  ;;  %v488_v13 = vmul.f32 0.5, %v4469_v27 }
  0xf1   : > { %2221 = vmatprep.mubr.bf16.mxu1 %v1166_v11  ;;  %v931_v0 = vadd.f32 1.0, %v3357_v18  ;;  %3372 = verf.f32 %v643_v5  ;;  %v572_v42 = vmul.f32 0.70710677, %v4504_v12  ;;  %v3359_v20 = vpop.eup %3358  ;;  %v650_v17 = vmul.f32 0.70710677, %v4509_v49 }
  0xf2   : > { %v1123_v25 = vpack.c.bf16 %v997_v2, %v991_v16  ;;  %v1075_v30 = vmul.f32 %v925_v23, %v475_v44  ;;  %3374 = verf.f32 %v566_v21  ;;  %v854_v43 = vadd.f32 1.0, %v3359_v20 }
  0xf3   : > { %v3361_v22 = vpop.eup %3360  ;;  %v1081_v6 = vmul.f32 %v931_v0, %v481_v1  ;;  %v494_v39 = vmul.f32 0.5, %v4472_v38  ;;  %3376 = verf.f32 %v572_v42  ;;  %v403_v31 = vmul.f32 0.5, %v4481_v35  ;;  %v4533_v35 = vld [vmem:[%s3675_s4 + $0x298] sm:$0xff]  ;;  %v283_v1 = vld [vmem:[%s3675_s4 + $0x290] sm:$0xff] }
  0xf4   : > { %v3363_v27 = vpop.eup %3362  ;;  %2152 = vmatmul.mubr.bf16.gmra.mrb[12].mxu0 %v1123_v25  ;;  %v860_v40 = vadd.f32 1.0, %v3361_v22  ;;  %3378 = verf.f32 %v650_v17  ;;  %v565_v24 = vmul.f32 0.70710677, %v4515_v26  ;;  %v1004_v4 = vmul.f32 %v854_v43, %v404_v15 }
  0xf5   : > { %v3365_v28 = vpop.eup %3364  ;;  %v1165_v41 = vpack.c.bf16 %v1081_v6, %v1075_v30  ;;  %v938_v19 = vadd.f32 1.0, %v3363_v27  ;;  %v571_v54 = vmul.f32 0.70710677, %v4519_v14  ;;  %v409_v33 = vmul.f32 0.5, %v4485_v46 }
  0xf6   : > { %v1010_v38 = vmul.f32 %v860_v40, %v410_v63  ;;  %v944_v36 = vadd.f32 1.0, %v3365_v28  ;;  %3380 = verf.f32 %v565_v24  ;;  %v3367_v45 = vpop.eup %3366  ;;  %v487_v29 = vmul.f32 0.5, %v4490_v34 }
  0xf7   : > { %2222 = vmatmul.mubr.bf16.gmra.mrb[64].mxu1 %v1165_v41  ;;  %v1088_v56 = vmul.f32 %v938_v19, %v488_v13  ;;  %3382 = verf.f32 %v571_v54  ;;  %v649_v37 = vmul.f32 0.70710677, %v4525_v3  ;;  %v853_v47 = vadd.f32 1.0, %v3367_v45 }
  0xf8   : > { %v3369_v32 = vpop.eup %3368  ;;  %v1130_v51 = vpack.c.bf16 %v1010_v38, %v1004_v4  ;;  %v1094_v60 = vmul.f32 %v944_v36, %v494_v39  ;;  %v493_v46 = vmul.f32 0.5, %v4493_v61  ;;  %v578_v55 = vmul.f32 0.70710677, %v4530_v52 }
  0xf9   : > { %v859_v48 = vadd.f32 1.0, %v3369_v32  ;;  %3384 = verf.f32 %v649_v37  ;;  %v584_v44 = vmul.f32 0.70710677, %v4533_v35  ;;  %v3371_v57 = vpop.eup %3370  ;;  %v1003_v7 = vmul.f32 %v853_v47, %v403_v31 }
  0xfa   : > { %2161 = vmatprep.mubr.bf16.mxu0 %v1130_v51  ;;  %v1172_v34 = vpack.c.bf16 %v1094_v60, %v1088_v56  ;;  %v416_v58 = vmul.f32 0.5, %v4499_v10  ;;  %v422_v8 = vmul.f32 0.5, %v4504_v12  ;;  %v937_v9 = vadd.f32 1.0, %v3371_v57 }
  0xfb   : > { %v3373_v53 = vpop.eup %3372  ;;  %v1009_v59 = vmul.f32 %v859_v48, %v409_v33  ;;  %3386 = verf.f32 %v578_v55  ;;  %v577_v61 = vmul.f32 0.70710677, %v277_v50  ;;  %v500_v11 = vmul.f32 0.5, %v4509_v49 }
  0xfc   : > { %v3375_v5 = vpop.eup %3374  ;;  %2231 = vmatprep.mubr.bf16.mxu1 %v1172_v34  ;;  %v943_v62 = vadd.f32 1.0, %v3373_v53  ;;  %3388 = verf.f32 %v584_v44  ;;  %v583_v16 = vmul.f32 0.70710677, %v283_v1  ;;  %v1087_v18 = vmul.f32 %v937_v9, %v487_v29 }
  0xfd   : > { %v3377_v15 = vpop.eup %3376  ;;  %v1129_v63 = vpack.c.bf16 %v1009_v59, %v1003_v7  ;;  %v866_v2 = vadd.f32 1.0, %v3375_v5  ;;  %3390 = verf.f32 %v577_v61  ;;  %v415_v13 = vmul.f32 0.5, %v4515_v26 }
  0xfe   : > { %v3379_v10 = vpop.eup %3378  ;;  %v1093_v23 = vmul.f32 %v943_v62, %v493_v46  ;;  %v872_v12 = vadd.f32 1.0, %v3377_v15  ;;  %3392 = verf.f32 %v583_v16  ;;  %v421_v49 = vmul.f32 0.5, %v4519_v14 }
  0xff   : > { %2162 = vmatmul.mubr.bf16.gmra.mrb[16].mxu0 %v1129_v63  ;;  %v1016_v21 = vmul.f32 %v866_v2, %v416_v58  ;;  %v950_v0 = vadd.f32 1.0, %v3379_v10  ;;  %v499_v39 = vmul.f32 0.5, %v4525_v3  ;;  %v428_v26 = vmul.f32 0.5, %v4530_v52 }
 0x100   : > { %v3381_v42 = vpop.eup %3380  ;;  %v1171_v20 = vpack.c.bf16 %v1093_v23, %v1087_v18  ;;  %v1022_v25 = vmul.f32 %v872_v12, %v422_v8  ;;  %v434_v14 = vmul.f32 0.5, %v4533_v35  ;;  %v427_v36 = vmul.f32 0.5, %v277_v50 }
 0x101   : > { %v3383_v30 = vpop.eup %3382  ;;  %v1100_v17 = vmul.f32 %v950_v0, %v500_v11  ;;  %v865_v22 = vadd.f32 1.0, %v3381_v42  ;;  %v433_v3 = vmul.f32 0.5, %v283_v1  ;;  %v1277_v18 = vlaneseq }
 0x102   : > { %2232 = vmatmul.mubr.bf16.gmra.mrb[68].mxu1 %v1171_v20  ;;  %v1136_v6 = vpack.c.bf16 %v1022_v25, %v1016_v21  ;;  %v871_v43 = vadd.f32 1.0, %v3383_v30 }
 0x103   : > { %v3385_v27 = vpop.eup %3384  ;;  %v1178_v40 = vpack.c.bf16 %v1100_v17, %v1100_v17  ;;  %v1015_v31 = vmul.f32 %v865_v22, %v415_v13  ;;  %v1278_v12 = vshrl.u32 %v1277_v18, 7  ;;  %v1275_v13 = vld [vmem:[%s5018_s2] sm:$0x3] }
 0x104   : > { %2171 = vmatprep.mubr.bf16.mxu0 %v1136_v6  ;;  %v1021_v24 = vmul.f32 %v871_v43, %v421_v49  ;;  %v949_v28 = vadd.f32 1.0, %v3385_v27 }
 0x105   : > { %v3387_v41 = vpop.eup %3386  ;;  %2241 = vmatprep.mubr.bf16.mxu1 %v1178_v40  ;;  %v1279_v0 = vsub.s32 0, %v1278_v12  ;;  %v1283_v42 = vsub.s32 1, %v1278_v12 }
 0x106   : > { %v3389_v4 = vpop.eup %3388  ;;  %v1135_v19 = vpack.c.bf16 %v1021_v24, %v1015_v31  ;;  %v1099_v54 = vmul.f32 %v949_v28, %v499_v39  ;;  %v878_v38 = vadd.f32 1.0, %v3387_v41 }
 0x107   : > { %v3391_v33 = vpop.eup %3390  ;;  %v884_v45 = vadd.f32 1.0, %v3389_v4  ;;  %v4603_v25 = vrot.slane %v1275_v13, %v1279_v0  ;;  %v4607_v30 = vrot.slane %v1275_v13, %v1283_v42 }
 0x108   : > { %v3393_v56 = vpop.eup %3392  ;;  %2172 = vmatmul.mubr.bf16.gmra.mrb[20].mxu0 %v1135_v19  ;;  %v1177_v29 = vpack.c.bf16 %v1099_v54, %v1099_v54  ;;  %v1028_v37 = vmul.f32 %v878_v38, %v428_v26  ;;  %v877_v32 = vadd.f32 1.0, %v3391_v33 }
 0x109   : > { %v1034_v51 = vmul.f32 %v884_v45, %v434_v14  ;;  %v883_v60 = vadd.f32 1.0, %v3393_v56 }
 0x10a   : > { %2242 = vmatmul.mubr.bf16.gmra.mrb[72].mxu1 %v1177_v29  ;;  %v1027_v52 = vmul.f32 %v877_v32, %v427_v36 }
 0x10b   : > { %v1142_v47 = vpack.c.bf16 %v1034_v51, %v1028_v37  ;;  %v1033_v46 = vmul.f32 %v883_v60, %v433_v3 }
 0x10d   : > { %2181 = vmatprep.mubr.bf16.mxu0 %v1142_v47  ;;  %v1141_v35 = vpack.c.bf16 %v1033_v46, %v1027_v52 }
 0x110   : > { %2182 = vmatmul.mubr.bf16.gmra.mrb[24].mxu0 %v1141_v35 }
 0x126   : > { %v4550_v48 = vpop.f32.mrb[0].mxu1 }
 0x127   : > { %v4552_v50 = vpop.f32.mrb[1].mxu1 }
 0x128   : > { %v4554_v55 = vpop.f32.mrb[2].mxu1 }
 0x129   : > { %v4556_v44 = vpop.f32.mrb[3].mxu1 }
 0x12e   : > { %v4558_v1 = vpop.f32.mrb[4].mxu1 }
 0x12f   : > { %v4560_v57 = vpop.f32.mrb[5].mxu1 }
 0x130   : > { %v4562_v34 = vpop.f32.mrb[6].mxu1 }
 0x131   : > { %v4564_v7 = vpop.f32.mrb[7].mxu1 }
 0x136   : > { %v4566_v58 = vpop.f32.mrb[8].mxu1 }
 0x137   : > { %v4568_v8 = vpop.f32.mrb[9].mxu1 }
 0x138   : > { %v4570_v53 = vpop.f32.mrb[10].mxu1 }
 0x139   : > { %v4572_v59 = vpop.f32.mrb[11].mxu1 }
 0x141   : > { %v4574_v9 = vpop.f32.mrb[12].mxu1 }
 0x142   : > { %v4576_v61 = vpop.f32.mrb[13].mxu1 }
 0x143   : > { %v4578_v5 = vpop.f32.mrb[14].mxu1 }
 0x144   : > { %v4580_v62 = vpop.f32.mrb[15].mxu1 }
 0x149   : > { %v4582_v11 = vpop.f32.mrb[16].mxu1 }
 0x14a   : > { %v4584_v16 = vpop.f32.mrb[17].mxu1 }
 0x14b   : > { %v4586_v15 = vpop.f32.mrb[18].mxu1 }
 0x14c   : > { %v4588_v63 = vpop.f32.mrb[19].mxu1 }
 0x155   : > { %v4590_v2 = vpop.f32.mrb[20].mxu1 }
 0x156   : > { %v4592_v10 = vpop.f32.mrb[21].mxu1 }
 0x157   : > { %v4594_v23 = vpop.f32.mrb[22].mxu1 }
 0x158   : > { %v4596_v21 = vpop.f32.mrb[23].mxu1 }
 0x15e   : > { %v4601_v20 = vpop.f32.mrb[24].mxu1 }
 0x15f   : > { %v4605_v49 = vpop.f32.mrb[25].mxu1 }
 0x160   : > { %v1865_v17 = vpop.f32.mrb[26].mxu1 }
 0x161   : > { %v4610_v22 = vadd.f32 %v1865_v17, %v4603_v25  ;;  %v1867_v6 = vpop.f32.mrb[27].mxu1 }
 0x162   : > { %v4613_v43 = vadd.f32 %v1867_v6, %v4607_v30 }
 0x164   : > { %5021 = vst [vmem:[#allocation3_spill] sm:$0xff] %v4613_v43 }
 0x168   : > { %v1871_v39 = vpop.f32.mrb[28].mxu1 }
 0x169   : > { %v1872_v27 = vadd.f32 %v1871_v39, %v4603_v25  ;;  %v1873_v40 = vpop.f32.mrb[29].mxu1 }
 0x16a   : > { %v1874_v31 = vadd.f32 %v1873_v40, %v4607_v30  ;;  %v1875_v24 = vpop.f32.mrb[30].mxu1 }
 0x16b   : > { %v2032_v28 = vpop.f32.mrb[28].mxu0  ;;  %v1876_v26 = vadd.f32 %v1875_v24, %v4603_v25  ;;  %v1877_v41 = vpop.f32.mrb[31].mxu1 }
 0x16c   : > { %v4618_v14 = vadd.f32 %v2032_v28, %v1872_v27  ;;  %v2034_v4 = vpop.f32.mrb[29].mxu0  ;;  %v1878_v19 = vadd.f32 %v1877_v41, %v4607_v30 }
 0x16d   : > { %v4621_v54 = vadd.f32 %v2034_v4, %v1874_v31  ;;  %v2036_v38 = vpop.f32.mrb[30].mxu0 }
 0x16e   : > { %v4623_v36 = vadd.f32 %v2036_v38, %v1876_v26  ;;  %v2038_v33 = vpop.f32.mrb[31].mxu0 }
 0x16f   : > { %v4625_v45 = vadd.f32 %v2038_v33, %v1878_v19 }
 0x175   : > { %v1881_v3 = vpop.f32.mrb[32].mxu1 }
 0x176   : > { %v1882_v56 = vadd.f32 %v1881_v3, %v4603_v25  ;;  %v1883_v29 = vpop.f32.mrb[33].mxu1 }
 0x177   : > { %v2042_v37 = vpop.f32.mrb[32].mxu0  ;;  %v1884_v32 = vadd.f32 %v1883_v29, %v4607_v30  ;;  %v1885_v51 = vpop.f32.mrb[34].mxu1 }
 0x178   : > { %v4629_v60 = vadd.f32 %v2042_v37, %v1882_v56  ;;  %v2044_v52 = vpop.f32.mrb[33].mxu0  ;;  %v1886_v47 = vadd.f32 %v1885_v51, %v4603_v25  ;;  %v1887_v46 = vpop.f32.mrb[35].mxu1 }
 0x179   : > { %v4632_v35 = vadd.f32 %v2044_v52, %v1884_v32  ;;  %v2046_v18 = vpop.f32.mrb[34].mxu0  ;;  %v1888_v12 = vadd.f32 %v1887_v46, %v4607_v30 }
 0x17a   : > { %v4635_v0 = vadd.f32 %v2046_v18, %v1886_v47  ;;  %v2048_v13 = vpop.f32.mrb[35].mxu0 }
 0x17b   : > { %v4637_v42 = vadd.f32 %v2048_v13, %v1888_v12 }
 0x17f   : > { %v1891_v17 = vpop.f32.mrb[36].mxu1 }
 0x180   : > { %v1892_v6 = vadd.f32 %v1891_v17, %v4603_v25  ;;  %v1893_v39 = vpop.f32.mrb[37].mxu1 }
 0x181   : > { %v2052_v27 = vpop.f32.mrb[36].mxu0  ;;  %v1894_v40 = vadd.f32 %v1893_v39, %v4607_v30  ;;  %v1895_v31 = vpop.f32.mrb[38].mxu1 }
 0x182   : > { %v4641_v24 = vadd.f32 %v2052_v27, %v1892_v6  ;;  %v2054_v28 = vpop.f32.mrb[37].mxu0  ;;  %v1896_v26 = vadd.f32 %v1895_v31, %v4603_v25  ;;  %v1897_v41 = vpop.f32.mrb[39].mxu1 }
 0x183   : > { %v4644_v4 = vadd.f32 %v2054_v28, %v1894_v40  ;;  %v2056_v19 = vpop.f32.mrb[38].mxu0  ;;  %v1898_v38 = vadd.f32 %v1897_v41, %v4607_v30 }
 0x184   : > { %v4647_v33 = vadd.f32 %v2056_v19, %v1896_v26  ;;  %v2058_v3 = vpop.f32.mrb[39].mxu0 }
 0x185   : > { %v4649_v56 = vadd.f32 %v2058_v3, %v1898_v38 }
 0x18a   : > { %v1901_v29 = vpop.f32.mrb[40].mxu1 }
 0x18b   : > { %v1902_v37 = vadd.f32 %v1901_v29, %v4603_v25  ;;  %v1903_v32 = vpop.f32.mrb[41].mxu1 }
 0x18c   : > { %v1904_v51 = vadd.f32 %v1903_v32, %v4607_v30  ;;  %v1905_v52 = vpop.f32.mrb[42].mxu1 }
 0x18d   : > { %v2062_v47 = vpop.f32.mrb[40].mxu0  ;;  %v1906_v46 = vadd.f32 %v1905_v52, %v4603_v25  ;;  %v1907_v18 = vpop.f32.mrb[43].mxu1 }
 0x18e   : > { %v4654_v12 = vadd.f32 %v2062_v47, %v1902_v37  ;;  %v2064_v13 = vpop.f32.mrb[41].mxu0  ;;  %v1908_v17 = vadd.f32 %v1907_v18, %v4607_v30 }
 0x18f   : > { %v4657_v6 = vadd.f32 %v2064_v13, %v1904_v51  ;;  %v2066_v39 = vpop.f32.mrb[42].mxu0 }
 0x190   : > { %v4659_v27 = vadd.f32 %v2066_v39, %v1906_v46  ;;  %v2068_v40 = vpop.f32.mrb[43].mxu0 }
 0x191   : > { %v4661_v31 = vadd.f32 %v2068_v40, %v1908_v17 }
 0x195   : > { %v1911_v28 = vpop.f32.mrb[44].mxu1 }
 0x196   : > { %v1912_v26 = vadd.f32 %v1911_v28, %v4603_v25  ;;  %v1913_v41 = vpop.f32.mrb[45].mxu1 }
 0x197   : > { %v1914_v19 = vadd.f32 %v1913_v41, %v4607_v30  ;;  %v1915_v38 = vpop.f32.mrb[46].mxu1 }
 0x198   : > { %v2072_v3 = vpop.f32.mrb[44].mxu0  ;;  %v1916_v29 = vadd.f32 %v1915_v38, %v4603_v25  ;;  %v1917_v37 = vpop.f32.mrb[47].mxu1 }
 0x199   : > { %v4666_v32 = vadd.f32 %v2072_v3, %v1912_v26  ;;  %v2074_v51 = vpop.f32.mrb[45].mxu0  ;;  %v1918_v52 = vadd.f32 %v1917_v37, %v4607_v30 }
 0x19a   : > { %v4669_v47 = vadd.f32 %v2074_v51, %v1914_v19  ;;  %v2076_v46 = vpop.f32.mrb[46].mxu0 }
 0x19b   : > { %v4671_v18 = vadd.f32 %v2076_v46, %v1916_v29  ;;  %v2078_v13 = vpop.f32.mrb[47].mxu0  ;;  %v1804_v46 = vadd.f32 %v4552_v50, %v4607_v30 }
 0x19c   : > { %v4673_v17 = vadd.f32 %v2078_v13, %v1918_v52  ;;  %v1802_v52 = vadd.f32 %v4550_v48, %v4603_v25 }
 0x19d   : > { %v1921_v39 = vpop.f32.mrb[48].mxu1 }
 0x19e   : > { %v1922_v40 = vadd.f32 %v1921_v39, %v4603_v25  ;;  %v1923_v28 = vpop.f32.mrb[49].mxu1 }
 0x19f   : > { %v1924_v41 = vadd.f32 %v1923_v28, %v4607_v30  ;;  %v1925_v26 = vpop.f32.mrb[50].mxu1  ;;  %v1806_v28 = vadd.f32 %v4554_v55, %v4603_v25 }
 0x1a0   : > { %v2082_v38 = vpop.f32.mrb[48].mxu0  ;;  %v1926_v3 = vpop.f32.mrb[51].mxu1 }
 0x1a1   : > { %v4677_v43 = vadd.f32 %v2082_v38, %v1922_v40  ;;  %v2084_v37 = vpop.f32.mrb[49].mxu0  ;;  %v1808_v3 = vadd.f32 %v4556_v44, %v4607_v30 }
 0x1a2   : > { %v4680_v19 = vadd.f32 %v2084_v37, %v1924_v41  ;;  %v2086_v29 = vpop.f32.mrb[50].mxu0 }
 0x1a3   : > { %v2087_v51 = vpop.f32.mrb[51].mxu0 }
 0x1a8   : > { %v2123_v13 = vpop.f32.mrb[0].mxu0  ;;  %v2193_v39 = vpop.f32.mrb[52].mxu1 }
 0x1a9   : > { %v2710_v40 = vadd.f32 %v2123_v13, %v1802_v52  ;;  %v2194_v26 = vadd.f32 %v2193_v39, %v4618_v14  ;;  %v2125_v38 = vpop.f32.mrb[1].mxu0  ;;  %v2195_v41 = vpop.f32.mrb[53].mxu1  ;;  %v1816_v39 = vadd.f32 %v4562_v34, %v4603_v25 }
 0x1aa   : > { %v2712_v37 = vadd.f32 %v2125_v38, %v1804_v46  ;;  %v2196_v48 = vadd.f32 %v2195_v41, %v4621_v54  ;;  %v2127_v29 = vpop.f32.mrb[2].mxu0  ;;  %v2197_v51 = vpop.f32.mrb[54].mxu1  ;;  %v1814_v46 = vadd.f32 %v4560_v57, %v4607_v30 }
 0x1ab   : > { %2250 = vst [vmem:[%s4692_s12] sm:$0xff] %v2710_v40  ;;  %2279 = vst [vmem:[%s4692_s12 + $0xe0] sm:$0xff] %v2194_v26  ;;  %v2714_v50 = vadd.f32 %v2127_v29, %v1806_v28  ;;  %v2198_v55 = vadd.f32 %v2197_v51, %v4623_v36  ;;  %v2129_v44 = vpop.f32.mrb[3].mxu0  ;;  %v2199_v14 = vpop.f32.mrb[55].mxu1  ;;  %v1812_v36 = vadd.f32 %v4558_v1, %v4603_v25 }
 0x1ac   : > { %2252 = vst.msk [vmem:[%s4692_s12 + $0x8] sm:$0xff] %vm2251_vm0, %v2712_v37  ;;  %2280 = vst.msk [vmem:[%s4692_s12 + $0xe8] sm:$0xff] %vm2251_vm0, %v2196_v48  ;;  %v2716_v54 = vadd.f32 %v2129_v44, %v1808_v3  ;;  %v2200_v52 = vadd.f32 %v2199_v14, %v4625_v45  ;;  %v1818_v40 = vadd.f32 %v4564_v7, %v4607_v30 }
 0x1ad   : > { %2253 = vst [vmem:[%s4692_s12 + $0x10] sm:$0xff] %v2714_v50  ;;  %2281 = vst [vmem:[%s4692_s12 + $0xf0] sm:$0xff] %v2198_v55 }
 0x1ae   : > { %2254 = vst.msk [vmem:[%s4692_s12 + $0x18] sm:$0xff] %vm2251_vm0, %v2716_v54  ;;  %2282 = vst.msk [vmem:[%s4692_s12 + $0xf8] sm:$0xff] %vm2251_vm0, %v2200_v52 }
 0x1b1   : > { %v2133_v13 = vpop.f32.mrb[4].mxu0 }
 0x1b2   : > { %v2718_v28 = vadd.f32 %v2133_v13, %v1812_v36  ;;  %v2135_v45 = vpop.f32.mrb[5].mxu0 }
 0x1b3   : > { %v2720_v26 = vadd.f32 %v2135_v45, %v1814_v46  ;;  %v2137_v38 = vpop.f32.mrb[6].mxu0 }
 0x1b4   : > { %2255 = vst [vmem:[%s4692_s12 + $0x20] sm:$0xff] %v2718_v28  ;;  %v2203_v1 = vpop.f32.mrb[56].mxu1  ;;  %v2722_v41 = vadd.f32 %v2137_v38, %v1816_v39  ;;  %v2139_v57 = vpop.f32.mrb[7].mxu0 }
 0x1b5   : > { %v2204_v3 = vadd.f32 %v2203_v1, %v4629_v60  ;;  %2256 = vst.msk [vmem:[%s4692_s12 + $0x28] sm:$0xff] %vm2251_vm0, %v2720_v26  ;;  %v2205_v34 = vpop.f32.mrb[57].mxu1  ;;  %v2724_v37 = vadd.f32 %v2139_v57, %v1818_v40  ;;  %v1822_v60 = vadd.f32 %v4566_v58, %v4603_v25  ;;  %v1834_v40 = vadd.f32 %v4576_v61, %v4607_v30 }
 0x1b6   : > { %v2206_v48 = vadd.f32 %v2205_v34, %v4632_v35  ;;  %2257 = vst [vmem:[%s4692_s12 + $0x30] sm:$0xff] %v2722_v41  ;;  %v2207_v7 = vpop.f32.mrb[58].mxu1  ;;  %v1824_v35 = vadd.f32 %v4568_v8, %v4607_v30 }
 0x1b7   : > { %2283 = vst [vmem:[%s4692_s12 + $0x100] sm:$0xff] %v2204_v3  ;;  %v2208_v29 = vadd.f32 %v2207_v7, %v4635_v0  ;;  %2258 = vst.msk [vmem:[%s4692_s12 + $0x38] sm:$0xff] %vm2251_vm0, %v2724_v37  ;;  %v2209_v51 = vpop.f32.mrb[59].mxu1  ;;  %v1826_v0 = vadd.f32 %v4570_v53, %v4603_v25 }
 0x1b8   : > { %2284 = vst.msk [vmem:[%s4692_s12 + $0x108] sm:$0xff] %vm2251_vm0, %v2206_v48  ;;  %v2210_v50 = vadd.f32 %v2209_v51, %v4637_v42  ;;  %v1828_v42 = vadd.f32 %v4572_v59, %v4607_v30 }
 0x1b9   : > { %2285 = vst [vmem:[%s4692_s12 + $0x110] sm:$0xff] %v2208_v29 }
 0x1ba   : > { %2286 = vst.msk [vmem:[%s4692_s12 + $0x118] sm:$0xff] %vm2251_vm0, %v2210_v50 }
 0x1bb   : > { %v2143_v55 = vpop.f32.mrb[8].mxu0 }
 0x1bc   : > { %v2726_v44 = vadd.f32 %v2143_v55, %v1822_v60  ;;  %v2145_v14 = vpop.f32.mrb[9].mxu0 }
 0x1bd   : > { %v2728_v52 = vadd.f32 %v2145_v14, %v1824_v35  ;;  %v2147_v36 = vpop.f32.mrb[10].mxu0 }
 0x1be   : > { %v2213_v54 = vpop.f32.mrb[60].mxu1  ;;  %2259 = vst [vmem:[%s4692_s12 + $0x40] sm:$0xff] %v2726_v44  ;;  %v2730_v46 = vadd.f32 %v2147_v36, %v1826_v0  ;;  %v2149_v53 = vpop.f32.mrb[11].mxu0 }
 0x1bf   : > { %v2214_v58 = vadd.f32 %v2213_v54, %v4641_v24  ;;  %v2215_v8 = vpop.f32.mrb[61].mxu1  ;;  %2260 = vst.msk [vmem:[%s4692_s12 + $0x48] sm:$0xff] %vm2251_vm0, %v2728_v52  ;;  %v2732_v28 = vadd.f32 %v2149_v53, %v1828_v42 }
 0x1c0   : > { %v2216_v13 = vadd.f32 %v2215_v8, %v4644_v4  ;;  %v2217_v39 = vpop.f32.mrb[62].mxu1  ;;  %2261 = vst [vmem:[%s4692_s12 + $0x50] sm:$0xff] %v2730_v46  ;;  %v1832_v4 = vadd.f32 %v4574_v9, %v4603_v25 }
 0x1c1   : > { %2287 = vst [vmem:[%s4692_s12 + $0x120] sm:$0xff] %v2214_v58  ;;  %v2218_v59 = vadd.f32 %v2217_v39, %v4647_v33  ;;  %v2219_v45 = vpop.f32.mrb[63].mxu1  ;;  %2262 = vst.msk [vmem:[%s4692_s12 + $0x58] sm:$0xff] %vm2251_vm0, %v2732_v28  ;;  %v1836_v33 = vadd.f32 %v4578_v5, %v4603_v25  ;;  %v1852_v58 = vadd.f32 %v4590_v2, %v4603_v25 }
 0x1c2   : > { %2288 = vst.msk [vmem:[%s4692_s12 + $0x128] sm:$0xff] %vm2251_vm0, %v2216_v13  ;;  %v2220_v24 = vadd.f32 %v2219_v45, %v4649_v56  ;;  %v1838_v56 = vadd.f32 %v4580_v62, %v4607_v30 }
 0x1c3   : > { %2289 = vst [vmem:[%s4692_s12 + $0x130] sm:$0xff] %v2218_v59 }
 0x1c4   : > { %2290 = vst.msk [vmem:[%s4692_s12 + $0x138] sm:$0xff] %vm2251_vm0, %v2220_v24 }
 0x1c7   : > { %v2153_v26 = vpop.f32.mrb[12].mxu0 }
 0x1c8   : > { %v2734_v38 = vadd.f32 %v2153_v26, %v1832_v4  ;;  %v2155_v1 = vpop.f32.mrb[13].mxu0 }
 0x1c9   : > { %v2736_v41 = vadd.f32 %v2155_v1, %v1834_v40  ;;  %v2157_v57 = vpop.f32.mrb[14].mxu0  ;;  %v1864_v40 = vadd.f32 %v4605_v49, %v4607_v30 }
 0x1ca   : > { %2263 = vst [vmem:[%s4692_s12 + $0x60] sm:$0xff] %v2734_v38  ;;  %v2223_v9 = vpop.f32.mrb[64].mxu1  ;;  %v2738_v3 = vadd.f32 %v2157_v57, %v1836_v33  ;;  %v2159_v61 = vpop.f32.mrb[15].mxu0  ;;  %v5022_v57 = vld [vmem:[#allocation3_spill] sm:$0xff] }
 0x1cb   : > { %v2224_v34 = vadd.f32 %v2223_v9, %v4654_v12  ;;  %2264 = vst.msk [vmem:[%s4692_s12 + $0x68] sm:$0xff] %vm2251_vm0, %v2736_v41  ;;  %v2225_v5 = vpop.f32.mrb[65].mxu1  ;;  %v2740_v37 = vadd.f32 %v2159_v61, %v1838_v56  ;;  %v1842_v12 = vadd.f32 %v4582_v11, %v4603_v25 }
 0x1cc   : > { %v2226_v48 = vadd.f32 %v2225_v5, %v4657_v6  ;;  %2265 = vst [vmem:[%s4692_s12 + $0x70] sm:$0xff] %v2738_v3  ;;  %v2227_v62 = vpop.f32.mrb[66].mxu1  ;;  %v1844_v6 = vadd.f32 %v4584_v16, %v4607_v30 }
 0x1cd   : > { %2291 = vst [vmem:[%s4692_s12 + $0x140] sm:$0xff] %v2224_v34  ;;  %v2228_v7 = vadd.f32 %v2227_v62, %v4659_v27  ;;  %2266 = vst.msk [vmem:[%s4692_s12 + $0x78] sm:$0xff] %vm2251_vm0, %v2740_v37  ;;  %v2229_v29 = vpop.f32.mrb[67].mxu1  ;;  %v1846_v27 = vadd.f32 %v4586_v15, %v4603_v25 }
 0x1ce   : > { %2292 = vst.msk [vmem:[%s4692_s12 + $0x148] sm:$0xff] %vm2251_vm0, %v2226_v48  ;;  %v2230_v51 = vadd.f32 %v2229_v29, %v4661_v31  ;;  %v1848_v31 = vadd.f32 %v4588_v63, %v4607_v30 }
 0x1cf   : > { %2293 = vst [vmem:[%s4692_s12 + $0x150] sm:$0xff] %v2228_v7 }
 0x1d0   : > { %2294 = vst.msk [vmem:[%s4692_s12 + $0x158] sm:$0xff] %vm2251_vm0, %v2230_v51 }
 0x1d2   : > { %v2163_v50 = vpop.f32.mrb[16].mxu0 }
 0x1d3   : > { %v2742_v60 = vadd.f32 %v2163_v50, %v1842_v12  ;;  %v2165_v35 = vpop.f32.mrb[17].mxu0 }
 0x1d4   : > { %v2744_v55 = vadd.f32 %v2165_v35, %v1844_v6  ;;  %v2167_v0 = vpop.f32.mrb[18].mxu0 }
 0x1d5   : > { %2267 = vst [vmem:[%s4692_s12 + $0x80] sm:$0xff] %v2742_v60  ;;  %v2233_v11 = vpop.f32.mrb[68].mxu1  ;;  %v2746_v44 = vadd.f32 %v2167_v0, %v1846_v27  ;;  %v2169_v16 = vpop.f32.mrb[19].mxu0 }
 0x1d6   : > { %v2234_v14 = vadd.f32 %v2233_v11, %v4666_v32  ;;  %2268 = vst.msk [vmem:[%s4692_s12 + $0x88] sm:$0xff] %vm2251_vm0, %v2744_v55  ;;  %v2235_v15 = vpop.f32.mrb[69].mxu1  ;;  %v2748_v42 = vadd.f32 %v2169_v16, %v1848_v31 }
 0x1d7   : > { %v2236_v54 = vadd.f32 %v2235_v15, %v4669_v47  ;;  %2269 = vst [vmem:[%s4692_s12 + $0x90] sm:$0xff] %v2746_v44  ;;  %v2237_v63 = vpop.f32.mrb[70].mxu1  ;;  %v1854_v47 = vadd.f32 %v4592_v10, %v4607_v30 }
 0x1d8   : > { %2295 = vst [vmem:[%s4692_s12 + $0x160] sm:$0xff] %v2234_v14  ;;  %v2238_v52 = vadd.f32 %v2237_v63, %v4671_v18  ;;  %2270 = vst.msk [vmem:[%s4692_s12 + $0x98] sm:$0xff] %vm2251_vm0, %v2748_v42  ;;  %v2239_v36 = vpop.f32.mrb[71].mxu1  ;;  %v1856_v18 = vadd.f32 %v4594_v23, %v4603_v25 }
 0x1d9   : > { %2296 = vst.msk [vmem:[%s4692_s12 + $0x168] sm:$0xff] %vm2251_vm0, %v2236_v54  ;;  %v2240_v32 = vadd.f32 %v2239_v36, %v4673_v17  ;;  %v1858_v17 = vadd.f32 %v4596_v21, %v4607_v30 }
 0x1da   : > { %2297 = vst [vmem:[%s4692_s12 + $0x170] sm:$0xff] %v2238_v52 }
 0x1db   : > { %2298 = vst.msk [vmem:[%s4692_s12 + $0x178] sm:$0xff] %vm2251_vm0, %v2240_v32  ;;  %v2173_v8 = vpop.f32.mrb[20].mxu0 }
 0x1dc   : > { %v2750_v46 = vadd.f32 %v2173_v8, %v1852_v58  ;;  %v2175_v53 = vpop.f32.mrb[21].mxu0 }
 0x1dd   : > { %v2243_v2 = vpop.f32.mrb[72].mxu1  ;;  %v2752_v13 = vadd.f32 %v2175_v53, %v1854_v47  ;;  %v2177_v39 = vpop.f32.mrb[22].mxu0 }
 0x1de   : > { %2271 = vst [vmem:[%s4692_s12 + $0xa0] sm:$0xff] %v2750_v46  ;;  %v2244_v10 = vadd.f32 %v2243_v2, %v4677_v43  ;;  %v2245_v28 = vpop.f32.mrb[73].mxu1  ;;  %v2754_v59 = vadd.f32 %v2177_v39, %v1856_v18  ;;  %v2179_v45 = vpop.f32.mrb[23].mxu0  ;;  %v1862_v43 = vadd.f32 %v4601_v20, %v4603_v25 }
 0x1df   : > { %2272 = vst.msk [vmem:[%s4692_s12 + $0xa8] sm:$0xff] %vm2251_vm0, %v2752_v13  ;;  %v2246_v23 = vadd.f32 %v2245_v28, %v4680_v19  ;;  %v2756_v24 = vadd.f32 %v2179_v45, %v1858_v17  ;;  %v2247_v4 = vpop.f32.mrb[74].mxu1 }
 0x1e0   : > { %2299 = vst [vmem:[%s4692_s12 + $0x180] sm:$0xff] %v2244_v10  ;;  %2273 = vst [vmem:[%s4692_s12 + $0xb0] sm:$0xff] %v2754_v59  ;;  %v2248_v21 = vpop.f32.mrb[75].mxu1 }
 0x1e1   : > { %2300 = vst.msk [vmem:[%s4692_s12 + $0x188] sm:$0xff] %vm2251_vm0, %v2246_v23  ;;  %2274 = vst.msk [vmem:[%s4692_s12 + $0xb8] sm:$0xff] %vm2251_vm0, %v2756_v24 }
 0x1e3   : > { %v2183_v26 = vpop.f32.mrb[24].mxu0  ;;  %2307 = sbr.rel (!%p3531_p4) target bundleno = 567 (0x237), region = 36 }
 0x1e4   : > { %v2758_v19 = vadd.f32 %v2183_v26, %v1862_v43  ;;  %v2185_v33 = vpop.f32.mrb[25].mxu0 }
 0x1e5   : > { %v2760_v38 = vadd.f32 %v2185_v33, %v1864_v40  ;;  %v2187_v1 = vpop.f32.mrb[26].mxu0 }
 0x1e6   : > { %2275 = vst [vmem:[%s4692_s12 + $0xc0] sm:$0xff] %v2758_v19  ;;  %v2762_v56 = vadd.f32 %v2187_v1, %v4610_v22  ;;  %v2189_v41 = vpop.f32.mrb[27].mxu0 }
 0x1e7   : > { %2276 = vst.msk [vmem:[%s4692_s12 + $0xc8] sm:$0xff] %vm2251_vm0, %v2760_v38  ;;  %v2764_v9 = vadd.f32 %v2189_v41, %v5022_v57 }
 0x1e8   : > { %2277 = vst [vmem:[%s4692_s12 + $0xd0] sm:$0xff] %v2762_v56 }
 0x1e9   : > { %2278 = vst.msk [vmem:[%s4692_s12 + $0xd8] sm:$0xff] %vm2251_vm0, %v2764_v9 }
 0x1ea   : > { %s5032_s24 = smov (!%p2310_p8, %s2309_s24), 25 }
 0x1eb   : > { %s2673_s29 = sshll.u32 %s5032_s24, 8 }
 0x1ec   : > { %p2664_p9 = scmp.eq.s32.totalorder %s2673_s29, 0 }
 0x1ed   : > { %3394 = sdivrem.u32 (!%p2664_p9), %s5032_s24, 25 }
 0x1ee   : > { %2320 = sbr.rel (%p2664_p9) target bundleno = 567 (0x237), region = 40 }
 0x1f6   : > { %s4848_s20 = spop.drf %3394 }
 0x1f7   : > { %p2665_p10 = scmp.le.s32.totalorder %s4848_s20, 0 }
 0x1f8   : > { %s5023_s15 = smov (!%p2665_p10), %s4842_s28  ;;  %s5024_s8 = smov (!%p2665_p10), %s4692_s12 }
 0x1f9   : > { %2514 = sbr.rel (%p2665_p10) target bundleno = 538 (0x21a), region = 88  ;;  %s4857_s30 = smov (!%p2665_p10), 0  }
 0x1fa   : > { %s4859_s5 = smov (!%p2665_p10), 0  }
 0x200 LB: >> { %v2334_v20 = vld [vmem:[%s3460_s8] sm:$0xff]  ;;  %v2336_v25 = vld [vmem:[%s3460_s8 + $0x10] sm:$0xff]  ;;  %s2434_s6 = sadd.s32 1, %s3464_s30  ;;  %v2384_v44 = vld [vmem:[%s3460_s8 + $0x8] sm:$0xff]  ;;  %s2328_s5 = sadd.s32 1, %s3468_s5   ;;  %s3468_s5 = sphi %s4859_s5, %s2328_s5   ;;  %s3464_s30 = sphi %s4857_s30, %s5027_s30   ;;  %s3460_s8 = sphi %s5024_s8, %s5026_s8   ;;  %s3456_s15 = sphi %s5023_s15, %s5025_s15  }
 0x201   : >> { %v2338_v49 = vld [vmem:[%s3460_s8 + $0x20] sm:$0xff]  ;;  %2335 = vst [vmem:[%s3456_s15] sm:$0xff] %v2334_v20  ;;  %2337 = vst [vmem:[%s3456_s15 + $0x10] sm:$0xff] %v2336_v25  ;;  %v2340_v30 = vld [vmem:[%s3460_s8 + $0x30] sm:$0xff]  ;;  %p2435_p11 = scmp.ge.s32.totalorder %s2434_s6, %s4848_s20  ;;  %p2327_p12 = scmp.ge.s32.totalorder %s2328_s5, %s4848_s20 }
 0x202   : >> { %2339 = vst [vmem:[%s3456_s15 + $0x20] sm:$0xff] %v2338_v49  ;;  %v2342_v22 = vld [vmem:[%s3460_s8 + $0x40] sm:$0xff]  ;;  %v2344_v3 = vld [vmem:[%s3460_s8 + $0x50] sm:$0xff]  ;;  %2341 = vst [vmem:[%s3456_s15 + $0x30] sm:$0xff] %v2340_v30 }
 0x203   : >> { %2343 = vst [vmem:[%s3456_s15 + $0x40] sm:$0xff] %v2342_v22  ;;  %2345 = vst [vmem:[%s3456_s15 + $0x50] sm:$0xff] %v2344_v3  ;;  %v2346_v61 = vld [vmem:[%s3460_s8 + $0x60] sm:$0xff]  ;;  %v2348_v34 = vld [vmem:[%s3460_s8 + $0x70] sm:$0xff]  ;;  %s5034_s6 = smov (%p2435_p11, %s2434_s6), 0 }
 0x204   : >> { %v2350_v5 = vld [vmem:[%s3460_s8 + $0x80] sm:$0xff]  ;;  %2347 = vst [vmem:[%s3456_s15 + $0x60] sm:$0xff] %v2346_v61  ;;  %2349 = vst [vmem:[%s3456_s15 + $0x70] sm:$0xff] %v2348_v34  ;;  %v2352_v37 = vld [vmem:[%s3460_s8 + $0x90] sm:$0xff]  ;;  %s2437_s7 = smul.u32 400, %s5034_s6  ;;  %s5027_s30 = smov %s5034_s6 }
 0x205   : >> { %2351 = vst [vmem:[%s3456_s15 + $0x80] sm:$0xff] %v2350_v5  ;;  %v2354_v48 = vld [vmem:[%s3460_s8 + $0xa0] sm:$0xff]  ;;  %v2356_v62 = vld [vmem:[%s3460_s8 + $0xb0] sm:$0xff]  ;;  %2353 = vst [vmem:[%s3456_s15 + $0x90] sm:$0xff] %v2352_v37 }
 0x206   : >> { %2355 = vst [vmem:[%s3456_s15 + $0xa0] sm:$0xff] %v2354_v48  ;;  %2357 = vst [vmem:[%s3456_s15 + $0xb0] sm:$0xff] %v2356_v62  ;;  %v2358_v7 = vld [vmem:[%s3460_s8 + $0xc0] sm:$0xff]  ;;  %v2360_v29 = vld [vmem:[%s3460_s8 + $0xd0] sm:$0xff]  ;;  %s4921_s9 = scalar_lea.vmem %s4692_s12, %s2437_s7 [#allocation2]   ;;  %s4924_s10 = scalar_lea.vmem %s4842_s28, %s2437_s7  }
 0x207   : >> { %v2362_v51 = vld [vmem:[%s3460_s8 + $0xe0] sm:$0xff]  ;;  %2359 = vst [vmem:[%s3456_s15 + $0xc0] sm:$0xff] %v2358_v7  ;;  %2361 = vst [vmem:[%s3456_s15 + $0xd0] sm:$0xff] %v2360_v29  ;;  %v2364_v12 = vld [vmem:[%s3460_s8 + $0xf0] sm:$0xff] }
 0x208   : >> { %2363 = vst [vmem:[%s3456_s15 + $0xe0] sm:$0xff] %v2362_v51  ;;  %v2366_v6 = vld [vmem:[%s3460_s8 + $0x100] sm:$0xff]  ;;  %v2368_v50 = vld [vmem:[%s3460_s8 + $0x110] sm:$0xff]  ;;  %2365 = vst [vmem:[%s3456_s15 + $0xf0] sm:$0xff] %v2364_v12 }
 0x209   : >> { %2367 = vst [vmem:[%s3456_s15 + $0x100] sm:$0xff] %v2366_v6  ;;  %2369 = vst [vmem:[%s3456_s15 + $0x110] sm:$0xff] %v2368_v50  ;;  %v2370_v27 = vld [vmem:[%s3460_s8 + $0x120] sm:$0xff]  ;;  %v2372_v60 = vld [vmem:[%s3460_s8 + $0x130] sm:$0xff] }
 0x20a   : >> { %v2374_v35 = vld [vmem:[%s3460_s8 + $0x140] sm:$0xff]  ;;  %2371 = vst [vmem:[%s3456_s15 + $0x120] sm:$0xff] %v2370_v27  ;;  %2373 = vst [vmem:[%s3456_s15 + $0x130] sm:$0xff] %v2372_v60  ;;  %v2376_v31 = vld [vmem:[%s3460_s8 + $0x150] sm:$0xff] }
 0x20b   : >> { %2375 = vst [vmem:[%s3456_s15 + $0x140] sm:$0xff] %v2374_v35  ;;  %v2378_v55 = vld [vmem:[%s3460_s8 + $0x160] sm:$0xff]  ;;  %v2380_v0 = vld [vmem:[%s3460_s8 + $0x170] sm:$0xff]  ;;  %2377 = vst [vmem:[%s3456_s15 + $0x150] sm:$0xff] %v2376_v31 }
 0x20c   : >> { %2379 = vst [vmem:[%s3456_s15 + $0x160] sm:$0xff] %v2378_v55  ;;  %2381 = vst [vmem:[%s3456_s15 + $0x170] sm:$0xff] %v2380_v0  ;;  %v2382_v11 = vld [vmem:[%s3460_s8 + $0x180] sm:$0xff]  ;;  %v2386_v16 = vld [vmem:[%s3460_s8 + $0x18] sm:$0xff] }
 0x20d   : >> { %2383 = vst [vmem:[%s3456_s15 + $0x180] sm:$0xff] %v2382_v11  ;;  %2385 = vst [vmem:[%s3456_s15 + $0x8] sm:$0xff] %v2384_v44  ;;  %v2388_v14 = vld [vmem:[%s3460_s8 + $0x28] sm:$0xff]  ;;  %v2390_v15 = vld [vmem:[%s3460_s8 + $0x38] sm:$0xff] }
 0x20e   : >> { %2387 = vst [vmem:[%s3456_s15 + $0x18] sm:$0xff] %v2386_v16  ;;  %v2392_v42 = vld [vmem:[%s3460_s8 + $0x48] sm:$0xff]  ;;  %2389 = vst [vmem:[%s3456_s15 + $0x28] sm:$0xff] %v2388_v14  ;;  %v2394_v54 = vld [vmem:[%s3460_s8 + $0x58] sm:$0xff] }
 0x20f   : >> { %2391 = vst [vmem:[%s3456_s15 + $0x38] sm:$0xff] %v2390_v15  ;;  %2393 = vst [vmem:[%s3456_s15 + $0x48] sm:$0xff] %v2392_v42  ;;  %v2396_v63 = vld [vmem:[%s3460_s8 + $0x68] sm:$0xff]  ;;  %v2398_v52 = vld [vmem:[%s3460_s8 + $0x78] sm:$0xff] }
 0x210   : >> { %2395 = vst [vmem:[%s3456_s15 + $0x58] sm:$0xff] %v2394_v54  ;;  %2397 = vst [vmem:[%s3456_s15 + $0x68] sm:$0xff] %v2396_v63  ;;  %v2400_v36 = vld [vmem:[%s3460_s8 + $0x88] sm:$0xff]  ;;  %v2402_v32 = vld [vmem:[%s3460_s8 + $0x98] sm:$0xff] }
 0x211   : >> { %2399 = vst [vmem:[%s3456_s15 + $0x78] sm:$0xff] %v2398_v52  ;;  %v2404_v58 = vld [vmem:[%s3460_s8 + $0xa8] sm:$0xff]  ;;  %2401 = vst [vmem:[%s3456_s15 + $0x88] sm:$0xff] %v2400_v36  ;;  %v2406_v47 = vld [vmem:[%s3460_s8 + $0xb8] sm:$0xff] }
 0x212   : >> { %2403 = vst [vmem:[%s3456_s15 + $0x98] sm:$0xff] %v2402_v32  ;;  %2405 = vst [vmem:[%s3456_s15 + $0xa8] sm:$0xff] %v2404_v58  ;;  %v2408_v8 = vld [vmem:[%s3460_s8 + $0xc8] sm:$0xff]  ;;  %v2410_v18 = vld [vmem:[%s3460_s8 + $0xd8] sm:$0xff] }
 0x213   : >> { %2407 = vst [vmem:[%s3456_s15 + $0xb8] sm:$0xff] %v2406_v47  ;;  %2409 = vst [vmem:[%s3456_s15 + $0xc8] sm:$0xff] %v2408_v8  ;;  %v2412_v46 = vld [vmem:[%s3460_s8 + $0xe8] sm:$0xff]  ;;  %v2414_v53 = vld [vmem:[%s3460_s8 + $0xf8] sm:$0xff]  ;;  %2330 = sbr.rel (!%p2327_p12) target bundleno = 512 (0x200), region = 94 }
 0x214   : >> { %2411 = vst [vmem:[%s3456_s15 + $0xd8] sm:$0xff] %v2410_v18  ;;  %v2416_v17 = vld [vmem:[%s3460_s8 + $0x108] sm:$0xff]  ;;  %2413 = vst [vmem:[%s3456_s15 + $0xe8] sm:$0xff] %v2412_v46  ;;  %v2418_v2 = vld [vmem:[%s3460_s8 + $0x118] sm:$0xff] }
 0x215   : >> { %2415 = vst [vmem:[%s3456_s15 + $0xf8] sm:$0xff] %v2414_v53  ;;  %2417 = vst [vmem:[%s3456_s15 + $0x108] sm:$0xff] %v2416_v17  ;;  %v2420_v13 = vld [vmem:[%s3460_s8 + $0x128] sm:$0xff]  ;;  %v2422_v39 = vld [vmem:[%s3460_s8 + $0x138] sm:$0xff] }
 0x216   : >> { %2419 = vst [vmem:[%s3456_s15 + $0x118] sm:$0xff] %v2418_v2  ;;  %2421 = vst [vmem:[%s3456_s15 + $0x128] sm:$0xff] %v2420_v13  ;;  %v2424_v10 = vld [vmem:[%s3460_s8 + $0x148] sm:$0xff]  ;;  %v2426_v28 = vld [vmem:[%s3460_s8 + $0x158] sm:$0xff] }
 0x217   : >> { %2423 = vst [vmem:[%s3456_s15 + $0x138] sm:$0xff] %v2422_v39  ;;  %v2428_v59 = vld [vmem:[%s3460_s8 + $0x168] sm:$0xff]  ;;  %2425 = vst [vmem:[%s3456_s15 + $0x148] sm:$0xff] %v2424_v10  ;;  %v2430_v45 = vld [vmem:[%s3460_s8 + $0x178] sm:$0xff] }
 0x218   : >> { %2427 = vst [vmem:[%s3456_s15 + $0x158] sm:$0xff] %v2426_v28  ;;  %2429 = vst [vmem:[%s3456_s15 + $0x168] sm:$0xff] %v2428_v59  ;;  %v2432_v23 = vld [vmem:[%s3460_s8 + $0x188] sm:$0xff]  ;;  %s5026_s8 = smov %s4921_s9 }
 0x219   : >> { %2431 = vst [vmem:[%s3456_s15 + $0x178] sm:$0xff] %v2430_v45  ;;  %2433 = vst [vmem:[%s3456_s15 + $0x188] sm:$0xff] %v2432_v23  ;;  %s5025_s15 = smov %s4924_s10 }
 0x21a PF: > { %3396 = sdivrem.u32 %s5032_s24, 25 }
 0x21b   : > { %s2666_s11 = smul.u32 400, %s4848_s20 }
 0x21d   : > { %s4997_s14 = scalar_lea.vmem %s4692_s12, %s2666_s11 [#allocation2]   ;;  %s5000_s17 = scalar_lea.vmem %s4842_s28, %s2666_s11  }
 0x223   : > { %s3397_s18 = spop.drf %3396 }
 0x224   : > { %p2668_p13 = scmp.le.s32.totalorder %s3397_s18, 0 }
 0x225   : > { %s3470_s4 = smov (!%p2668_p13), %s5000_s17   ;;  %s3474_s21 = smov (!%p2668_p13), %s4997_s14  }
 0x226   : > { %2528 = sbr.rel (%p2668_p13) target bundleno = 567 (0x237), region = 99  ;;  %s3478_s22 = smov (!%p2668_p13), 0  }
 0x227   : > { %s3482_s23 = smov (!%p2668_p13), 0  }
 0x22d LB: >> { %v2457_v24 = vld [vmem:[%s3476_s21] sm:$0xff]  ;;  %v2459_v4 = vld [vmem:[%s3476_s21 + $0x8] sm:$0xff]  ;;  %s2461_s12 = sadd.s32 1, %s3480_s22  ;;  %s2451_s23 = sadd.s32 1, %s3484_s23   ;;  %s3484_s23 = sphi %s3482_s23, %s2451_s23   ;;  %s3480_s22 = sphi %s3478_s22, %s3479_s22   ;;  %s3476_s21 = sphi %s3474_s21, %s2466_s21   ;;  %s3472_s4 = sphi %s3470_s4, %s2467_s4  }
 0x22e   : >> { %2458 = vst [vmem:[%s3472_s4] sm:$0xff] %v2457_v24  ;;  %2460 = vst [vmem:[%s3472_s4 + $0x8] sm:$0xff] %v2459_v4  ;;  %p2462_p0 = scmp.ge.s32.totalorder %s2461_s12, %s3397_s18  ;;  %p2450_p1 = scmp.ge.s32.totalorder %s2451_s23, %s3397_s18 }
 0x230   : >> { %s5036_s12 = smov (%p2462_p0, %s2461_s12), 0  ;;  %2453 = sbr.rel (!%p2450_p1) target bundleno = 557 (0x22d), region = 105 }
 0x231   : >> { %s2669_s24 = sshll.u32 %s5036_s12, 4  ;;  %s3479_s22 = smov %s5036_s12  }
 0x232   : >> { %s2466_s21 = scalar_lea.vmem %s4997_s14, %s2669_s24 [#allocation2]   ;;  %s2467_s4 = scalar_lea.vmem %s5000_s17, %s2669_s24  }
 0x237 PF: > { %p10_p2 = scmp.ge.s32.totalorder %s3521_s16, 6   ;;  %s5028_s12 = smov %s3448_s13 }
 0x238   : > { %s5029_s13 = smov %s3529_s19  ;;  %s5030_s14 = smov %s3521_s16 }
 0x239   :  { %12 = sbr.rel (!%p10_p2) target bundleno = 2 (0x2), region = 116 }

</bundles_post_ra>
